<compile_context>
chip_gen: v6e
topology: v6e:2x2x1
jax: 0.10.0
libtpu: 0.0.40
codegen_flags: <defaults>
</compile_context>

<pallas_src>
import functools
import math

import jax
import jax.numpy as jnp
from jax import lax
from jax.experimental import pallas as pl
from jax.experimental.pallas import tpu as pltpu

# ---- mini-BERT config (scaled-down bert-base) ----
VOCAB = 100
MAX_POS = 8
TYPE_VOCAB = 2
HIDDEN = 32
N_HEADS = 4
HEAD_DIM = HIDDEN // N_HEADS
INTERMEDIATE = 64
N_LAYERS = 2
LN_EPS = 1e-12


# ---------------------------------------------------------------------------
# In-kernel helpers
# ---------------------------------------------------------------------------
def _layernorm(x, gamma, beta):
    mu = jnp.mean(x, axis=-1, keepdims=True)
    var = jnp.mean((x - mu) ** 2, axis=-1, keepdims=True)
    return (x - mu) * lax.rsqrt(var + LN_EPS) * gamma + beta


# ---------------------------------------------------------------------------
# Fused forward kernel: whole model, one grid step
# ---------------------------------------------------------------------------
def fused_bert_kernel(x_ref, mask_ref, emb_g_ref, emb_b_ref,
                      wqkv_ref, bqkv_ref, wo_ref, bo_ref, ln1_g_ref, ln1_b_ref,
                      w1_ref, b1_ref, w2_ref, b2_ref, ln2_g_ref, ln2_b_ref,
                      wp_ref, bp_ref, wc_ref, bc_ref, out_ref, *, batch, seqlen):
    B, S, H, D = batch, seqlen, HIDDEN, HEAD_DIM

    # embeddings -> LayerNorm (embedding dropout(0.1): identity in eval)
    x = _layernorm(x_ref[...], emb_g_ref[...], emb_b_ref[...])        # (B*S, H)
    mask = mask_ref[...]                                               # (B, 1, S) additive
    scale = 1.0 / math.sqrt(D)

    for l in range(N_LAYERS):                                          # static unroll
        # ---- self-attention: fused QKV projection on batch-folded activation ----
        qkv = jnp.dot(x, wqkv_ref[l],
                      preferred_element_type=jnp.float32) + bqkv_ref[l]   # (B*S, 3H)
        qkv3 = qkv.reshape(B, S, 3 * H)                                   # (B, S, 3H)

        ctx_heads = []
        for h in range(N_HEADS):                                       # static head loop
            qh = qkv3[:, :, h * D:(h + 1) * D]                         # (B, S, D)
            kh = qkv3[:, :, H + h * D:H + (h + 1) * D]
            vh = qkv3[:, :, 2 * H + h * D:2 * H + (h + 1) * D]
            s = jnp.einsum('bqd,bkd->bqk', qh, kh,
                           preferred_element_type=jnp.float32) * scale + mask
            s = s - jnp.max(s, axis=-1, keepdims=True)
            e = jnp.exp(s)
            p = e * pl.reciprocal(jnp.sum(e, axis=-1, keepdims=True), approx=True)
            ctx_heads.append(jnp.einsum('bqk,bkd->bqd', p, vh,
                                        preferred_element_type=jnp.float32))
        ctx = jnp.concatenate(ctx_heads, axis=-1).reshape(B * S, H)     # (B*S, H)

        attn_out = jnp.dot(ctx, wo_ref[l],
                           preferred_element_type=jnp.float32) + bo_ref[l]
        # attention output dropout(0.1): identity in eval
        x = _layernorm(attn_out + x, ln1_g_ref[l], ln1_b_ref[l])

        # ---- feed-forward (exact erf GELU, as in BERT) ----
        hdn = jnp.dot(x, w1_ref[l],
                      preferred_element_type=jnp.float32) + b1_ref[l]
        hdn = 0.5 * hdn * (1.0 + lax.erf(hdn * 0.7071067811865475))
        y = jnp.dot(hdn, w2_ref[l],
                    preferred_element_type=jnp.float32) + b2_ref[l]
        # FFN output dropout(0.1): identity in eval
        x = _layernorm(y + x, ln2_g_ref[l], ln2_b_ref[l])

    # ---- pooler on [CLS] rows of the resident activation + classifier ----
    cls = x.reshape(B, S, H)[:, 0, :]                                   # (B, H)
    pooled = jnp.tanh(jnp.dot(cls, wp_ref[...],
                              preferred_element_type=jnp.float32) + bp_ref[...])
    # classifier-head dropout(0.1): identity in eval
    out_ref[...] = jnp.dot(pooled, wc_ref[...],
                           preferred_element_type=jnp.float32) + bc_ref[...]


# ---------------------------------------------------------------------------
# pallas_call wrapper (single launch, whole model)
# ---------------------------------------------------------------------------
def _full(shape):
    n = len(shape)
    return pl.BlockSpec(shape, lambda i, _n=n: (0,) * _n)


def fused_forward(x2d, mask_add, p):
    B = mask_add.shape[0]
    S = mask_add.shape[2]
    kernel = functools.partial(fused_bert_kernel, batch=B, seqlen=S)
    args = (x2d, mask_add, p["emb_ln_g"], p["emb_ln_b"],
            p["wqkv"], p["bqkv"], p["wo"], p["bo"], p["ln1_g"], p["ln1_b"],
            p["w1"], p["b1"], p["w2"], p["b2"], p["ln2_g"], p["ln2_b"],
            p["wp"], p["bp"], p["wc"], p["bc"])
    return pl.pallas_call(
        kernel,
        out_shape=jax.ShapeDtypeStruct((B, 1), jnp.float32),
        grid=(1,),
        in_specs=[_full(a.shape) for a in args],
        out_specs=_full((B, 1)),
        compiler_params=pltpu.CompilerParams(dimension_semantics=("arbitrary",)),
    )(*args)


# ---------------------------------------------------------------------------
# Parameters & forward (embedding gather stays in JAX glue)
# ---------------------------------------------------------------------------
def init_params(key):
    ks = iter(jax.random.split(key, 64))

    def w(shape):
        return (0.02 * jax.random.normal(next(ks), shape)).astype(jnp.float32)

    zeros = lambda s: jnp.zeros(s, jnp.float32)
    ones = lambda s: jnp.ones(s, jnp.float32)
    L, H, I = N_LAYERS, HIDDEN, INTERMEDIATE

    return {
        "word_emb": w((VOCAB, H)),
        "pos_emb": w((MAX_POS, H)),
        "type_emb": w((TYPE_VOCAB, H)),
        "emb_ln_g": ones((1, H)), "emb_ln_b": zeros((1, H)),
        # per-layer weights stacked along a leading layer axis (statically indexed
        # inside the fused kernel); QKV fused into one (H, 3H) projection.
        "wqkv": w((L, H, 3 * H)), "bqkv": zeros((L, 1, 3 * H)),
        "wo": w((L, H, H)), "bo": zeros((L, 1, H)),
        "ln1_g": ones((L, 1, H)), "ln1_b": zeros((L, 1, H)),
        "w1": w((L, H, I)), "b1": zeros((L, 1, I)),
        "w2": w((L, I, H)), "b2": zeros((L, 1, H)),
        "ln2_g": ones((L, 1, H)), "ln2_b": zeros((L, 1, H)),
        "wp": w((H, H)), "bp": zeros((1, H)),       # pooler
        "wc": w((H, 1)), "bc": zeros((1, 1)),       # classifier Linear(H, 1)
    }


def model_forward(params, input_ids, attention_mask):
    B, S = input_ids.shape
    # ---- embedding lookups (gather glue; token_type_ids implicitly all-zero) ----
    # TODO(synk): embedding gather (jnp.take) stays in plain JAX; a Pallas row-gather
    # DMA is overkill at VOCAB=100 / H=32.
    x = (jnp.take(params["word_emb"], input_ids, axis=0)
         + params["pos_emb"][None, :S, :]
         + params["type_emb"][0][None, None, :]).astype(jnp.float32)
    x2d = x.reshape(B * S, HIDDEN)                 # fold batch into sublanes

    # BERT-style additive attention mask: (B, 1, S)
    mask_add = ((1.0 - attention_mask.astype(jnp.float32)) * -10000.0)[:, None, :]

    return fused_forward(x2d, mask_add, params)


if __name__ == "__main__":
    key = jax.random.PRNGKey(0)
    pkey, ikey = jax.random.split(key)
    params = init_params(pkey)

    B, S = 2, 8
    input_ids = jax.random.randint(ikey, (B, S), 0, VOCAB, dtype=jnp.int32)
    attention_mask = jnp.ones((B, S), dtype=jnp.int32).at[1, 6:].set(0)

    logits = model_forward(params, input_ids, attention_mask)
    jax.block_until_ready(logits)
    assert logits.shape == (B, 1) and logits.dtype == jnp.float32
    print("KERNEL_OK")
</pallas_src>

<mosaic_0001>
module attributes {stable_mosaic.version = 11 : i64} {
  func.func @fused_bert_kernel(%arg0: i32, %arg1: memref<16x32xf32, #tpu.memory_space<vmem>>, %arg2: memref<2x1x8xf32, #tpu.memory_space<vmem>>, %arg3: memref<1x32xf32, #tpu.memory_space<vmem>>, %arg4: memref<1x32xf32, #tpu.memory_space<vmem>>, %arg5: memref<2x32x96xf32, #tpu.memory_space<vmem>>, %arg6: memref<2x1x96xf32, #tpu.memory_space<vmem>>, %arg7: memref<2x32x32xf32, #tpu.memory_space<vmem>>, %arg8: memref<2x1x32xf32, #tpu.memory_space<vmem>>, %arg9: memref<2x1x32xf32, #tpu.memory_space<vmem>>, %arg10: memref<2x1x32xf32, #tpu.memory_space<vmem>>, %arg11: memref<2x32x64xf32, #tpu.memory_space<vmem>>, %arg12: memref<2x1x64xf32, #tpu.memory_space<vmem>>, %arg13: memref<2x64x32xf32, #tpu.memory_space<vmem>>, %arg14: memref<2x1x32xf32, #tpu.memory_space<vmem>>, %arg15: memref<2x1x32xf32, #tpu.memory_space<vmem>>, %arg16: memref<2x1x32xf32, #tpu.memory_space<vmem>>, %arg17: memref<32x32xf32, #tpu.memory_space<vmem>>, %arg18: memref<1x32xf32, #tpu.memory_space<vmem>>, %arg19: memref<32x1xf32, #tpu.memory_space<vmem>>, %arg20: memref<1x1xf32, #tpu.memory_space<vmem>>, %arg21: memref<2x1xf32, #tpu.memory_space<vmem>>) attributes {dimension_semantics = [#tpu.dimension_semantics<arbitrary>], iteration_bounds = array<i64: 1>, scalar_prefetch = 0 : i64, scratch_operands = 0 : i64, tpu.core_type = #tpu.core_type<tc>, window_params = [{pipeline_mode = #tpu.pipeline_mode<synchronous>, transform_indices = @transform_0, window_bounds = array<i64: 16, 32>}, {pipeline_mode = #tpu.pipeline_mode<synchronous>, transform_indices = @transform_1, window_bounds = array<i64: 2, 1, 8>}, {pipeline_mode = #tpu.pipeline_mode<synchronous>, transform_indices = @transform_2, window_bounds = array<i64: 1, 32>}, {pipeline_mode = #tpu.pipeline_mode<synchronous>, transform_indices = @transform_3, window_bounds = array<i64: 1, 32>}, {pipeline_mode = #tpu.pipeline_mode<synchronous>, transform_indices = @transform_4, window_bounds = array<i64: 2, 32, 96>}, {pipeline_mode = #tpu.pipeline_mode<synchronous>, transform_indices = @transform_5, window_bounds = array<i64: 2, 1, 96>}, {pipeline_mode = #tpu.pipeline_mode<synchronous>, transform_indices = @transform_6, window_bounds = array<i64: 2, 32, 32>}, {pipeline_mode = #tpu.pipeline_mode<synchronous>, transform_indices = @transform_7, window_bounds = array<i64: 2, 1, 32>}, {pipeline_mode = #tpu.pipeline_mode<synchronous>, transform_indices = @transform_8, window_bounds = array<i64: 2, 1, 32>}, {pipeline_mode = #tpu.pipeline_mode<synchronous>, transform_indices = @transform_9, window_bounds = array<i64: 2, 1, 32>}, {pipeline_mode = #tpu.pipeline_mode<synchronous>, transform_indices = @transform_10, window_bounds = array<i64: 2, 32, 64>}, {pipeline_mode = #tpu.pipeline_mode<synchronous>, transform_indices = @transform_11, window_bounds = array<i64: 2, 1, 64>}, {pipeline_mode = #tpu.pipeline_mode<synchronous>, transform_indices = @transform_12, window_bounds = array<i64: 2, 64, 32>}, {pipeline_mode = #tpu.pipeline_mode<synchronous>, transform_indices = @transform_13, window_bounds = array<i64: 2, 1, 32>}, {pipeline_mode = #tpu.pipeline_mode<synchronous>, transform_indices = @transform_14, window_bounds = array<i64: 2, 1, 32>}, {pipeline_mode = #tpu.pipeline_mode<synchronous>, transform_indices = @transform_15, window_bounds = array<i64: 2, 1, 32>}, {pipeline_mode = #tpu.pipeline_mode<synchronous>, transform_indices = @transform_16, window_bounds = array<i64: 32, 32>}, {pipeline_mode = #tpu.pipeline_mode<synchronous>, transform_indices = @transform_17, window_bounds = array<i64: 1, 32>}, {pipeline_mode = #tpu.pipeline_mode<synchronous>, transform_indices = @transform_18, window_bounds = array<i64: 32, 1>}, {pipeline_mode = #tpu.pipeline_mode<synchronous>, transform_indices = @transform_19, window_bounds = array<i64: 1, 1>}, {pipeline_mode = #tpu.pipeline_mode<synchronous>, transform_indices = @transform_20, window_bounds = array<i64: 2, 1>}]} {
    %c0 = arith.constant 0 : index
    %c0_0 = arith.constant 0 : index
    %0 = vector.load %arg1[%c0, %c0_0] : memref<16x32xf32, #tpu.memory_space<vmem>>, vector<16x32xf32>
    %c0_1 = arith.constant 0 : index
    %c0_2 = arith.constant 0 : index
    %1 = vector.load %arg3[%c0_1, %c0_2] : memref<1x32xf32, #tpu.memory_space<vmem>>, vector<1x32xf32>
    %c0_3 = arith.constant 0 : index
    %c0_4 = arith.constant 0 : index
    %2 = vector.load %arg4[%c0_3, %c0_4] : memref<1x32xf32, #tpu.memory_space<vmem>>, vector<1x32xf32>
    %cst = arith.constant dense<0.000000e+00> : vector<16xf32>
    %3 = vector.multi_reduction <add>, %0, %cst [1] : vector<16x32xf32> to vector<16xf32>
    %4 = vector.shape_cast %3 : vector<16xf32> to vector<16x1xf32>
    %cst_5 = arith.constant 3.200000e+01 : f32
    %5 = vector.broadcast %cst_5 : f32 to vector<16x1xf32>
    %6 = arith.divf %4, %5 : vector<16x1xf32>
    %7 = vector.broadcast %6 : vector<16x1xf32> to vector<16x32xf32>
    %8 = arith.subf %0, %7 : vector<16x32xf32>
    %9 = arith.mulf %8, %8 : vector<16x32xf32>
    %cst_6 = arith.constant dense<0.000000e+00> : vector<16xf32>
    %10 = vector.multi_reduction <add>, %9, %cst_6 [1] : vector<16x32xf32> to vector<16xf32>
    %11 = vector.shape_cast %10 : vector<16xf32> to vector<16x1xf32>
    %cst_7 = arith.constant 3.200000e+01 : f32
    %12 = vector.broadcast %cst_7 : f32 to vector<16x1xf32>
    %13 = arith.divf %11, %12 : vector<16x1xf32>
    %14 = vector.broadcast %6 : vector<16x1xf32> to vector<16x32xf32>
    %15 = arith.subf %0, %14 : vector<16x32xf32>
    %cst_8 = arith.constant 9.99999996E-13 : f32
    %16 = vector.broadcast %cst_8 : f32 to vector<16x1xf32>
    %17 = arith.addf %13, %16 : vector<16x1xf32>
    %18 = math.rsqrt %17 : vector<16x1xf32>
    %19 = vector.broadcast %18 : vector<16x1xf32> to vector<16x32xf32>
    %20 = arith.mulf %15, %19 : vector<16x32xf32>
    %21 = vector.broadcast %1 : vector<1x32xf32> to vector<16x32xf32>
    %22 = arith.mulf %20, %21 : vector<16x32xf32>
    %23 = vector.broadcast %2 : vector<1x32xf32> to vector<16x32xf32>
    %24 = arith.addf %22, %23 : vector<16x32xf32>
    %c0_9 = arith.constant 0 : index
    %c0_10 = arith.constant 0 : index
    %c0_11 = arith.constant 0 : index
    %25 = vector.load %arg2[%c0_9, %c0_10, %c0_11] : memref<2x1x8xf32, #tpu.memory_space<vmem>>, vector<2x1x8xf32>
    %c0_12 = arith.constant 0 : index
    %c0_13 = arith.constant 0 : index
    %c0_14 = arith.constant 0 : index
    %26 = vector.load %arg5[%c0_12, %c0_13, %c0_14] : memref<2x32x96xf32, #tpu.memory_space<vmem>>, vector<1x32x96xf32>
    %27 = vector.shape_cast %26 : vector<1x32x96xf32> to vector<32x96xf32>
    %cst_15 = arith.constant dense<0.000000e+00> : vector<16x96xf32>
    %28 = tpu.matmul %24, %27, %cst_15 {dimension_numbers = #tpu.dot_dimension_numbers<[1], [0], [0], [1], [0, 0, 1, 1], [], []>} : vector<16x32xf32>, vector<32x96xf32>, vector<16x96xf32> -> vector<16x96xf32>
    %c0_16 = arith.constant 0 : index
    %c0_17 = arith.constant 0 : index
    %c0_18 = arith.constant 0 : index
    %29 = vector.load %arg6[%c0_16, %c0_17, %c0_18] : memref<2x1x96xf32, #tpu.memory_space<vmem>>, vector<1x1x96xf32>
    %30 = vector.shape_cast %29 : vector<1x1x96xf32> to vector<1x96xf32>
    %31 = vector.broadcast %30 : vector<1x96xf32> to vector<16x96xf32>
    %32 = arith.addf %28, %31 : vector<16x96xf32>
    %33 = vector.shape_cast %32 : vector<16x96xf32> to vector<2x8x96xf32>
    %34 = vector.extract_strided_slice %33 {offsets = [0, 0, 0], sizes = [2, 8, 8], strides = [1, 1, 1]} : vector<2x8x96xf32> to vector<2x8x8xf32>
    %35 = vector.extract_strided_slice %33 {offsets = [0, 0, 32], sizes = [2, 8, 8], strides = [1, 1, 1]} : vector<2x8x96xf32> to vector<2x8x8xf32>
    %36 = vector.extract_strided_slice %33 {offsets = [0, 0, 64], sizes = [2, 8, 8], strides = [1, 1, 1]} : vector<2x8x96xf32> to vector<2x8x8xf32>
    "tpu.trace_start"() <{level = 10 : i32, message = "bqd,bkd->bqk"}> : () -> ()
    %cst_19 = arith.constant dense<0.000000e+00> : vector<2x8x8xf32>
    %37 = tpu.matmul %34, %35, %cst_19 {dimension_numbers = #tpu.dot_dimension_numbers<[2], [2], [1], [1], [0, 0, 0, 1, 1, 1], [0], [0]>} : vector<2x8x8xf32>, vector<2x8x8xf32>, vector<2x8x8xf32> -> vector<2x8x8xf32>
    "tpu.trace_stop"() : () -> ()
    %cst_20 = arith.constant 0.353553385 : f32
    %38 = vector.broadcast %cst_20 : f32 to vector<2x8x8xf32>
    %39 = arith.mulf %37, %38 : vector<2x8x8xf32>
    %40 = vector.broadcast %25 : vector<2x1x8xf32> to vector<2x8x8xf32>
    %41 = arith.addf %39, %40 : vector<2x8x8xf32>
    %cst_21 = arith.constant dense<0xFF800000> : vector<2x8xf32>
    %42 = vector.multi_reduction <maximumf>, %41, %cst_21 [2] : vector<2x8x8xf32> to vector<2x8xf32>
    %43 = vector.shape_cast %42 : vector<2x8xf32> to vector<2x8x1xf32>
    %44 = vector.broadcast %43 : vector<2x8x1xf32> to vector<2x8x8xf32>
    %45 = arith.subf %41, %44 : vector<2x8x8xf32>
    %46 = math.exp %45 : vector<2x8x8xf32>
    %cst_22 = arith.constant dense<0.000000e+00> : vector<2x8xf32>
    %47 = vector.multi_reduction <add>, %46, %cst_22 [2] : vector<2x8x8xf32> to vector<2x8xf32>
    %48 = vector.shape_cast %47 : vector<2x8xf32> to vector<2x8x1xf32>
    %49 = tpu.reciprocal %48 {approx = true} : vector<2x8x1xf32> -> vector<2x8x1xf32>
    %50 = vector.broadcast %49 : vector<2x8x1xf32> to vector<2x8x8xf32>
    %51 = arith.mulf %46, %50 : vector<2x8x8xf32>
    "tpu.trace_start"() <{level = 10 : i32, message = "bqk,bkd->bqd"}> : () -> ()
    %cst_23 = arith.constant dense<0.000000e+00> : vector<2x8x8xf32>
    %52 = tpu.matmul %51, %36, %cst_23 {dimension_numbers = #tpu.dot_dimension_numbers<[2], [1], [1], [2], [0, 0, 0, 1, 1, 2], [0], [0]>} : vector<2x8x8xf32>, vector<2x8x8xf32>, vector<2x8x8xf32> -> vector<2x8x8xf32>
    "tpu.trace_stop"() : () -> ()
    %53 = vector.extract_strided_slice %33 {offsets = [0, 0, 8], sizes = [2, 8, 8], strides = [1, 1, 1]} : vector<2x8x96xf32> to vector<2x8x8xf32>
    %54 = vector.extract_strided_slice %33 {offsets = [0, 0, 40], sizes = [2, 8, 8], strides = [1, 1, 1]} : vector<2x8x96xf32> to vector<2x8x8xf32>
    %55 = vector.extract_strided_slice %33 {offsets = [0, 0, 72], sizes = [2, 8, 8], strides = [1, 1, 1]} : vector<2x8x96xf32> to vector<2x8x8xf32>
    "tpu.trace_start"() <{level = 10 : i32, message = "bqd,bkd->bqk"}> : () -> ()
    %cst_24 = arith.constant dense<0.000000e+00> : vector<2x8x8xf32>
    %56 = tpu.matmul %53, %54, %cst_24 {dimension_numbers = #tpu.dot_dimension_numbers<[2], [2], [1], [1], [0, 0, 0, 1, 1, 1], [0], [0]>} : vector<2x8x8xf32>, vector<2x8x8xf32>, vector<2x8x8xf32> -> vector<2x8x8xf32>
    "tpu.trace_stop"() : () -> ()
    %cst_25 = arith.constant 0.353553385 : f32
    %57 = vector.broadcast %cst_25 : f32 to vector<2x8x8xf32>
    %58 = arith.mulf %56, %57 : vector<2x8x8xf32>
    %59 = vector.broadcast %25 : vector<2x1x8xf32> to vector<2x8x8xf32>
    %60 = arith.addf %58, %59 : vector<2x8x8xf32>
    %cst_26 = arith.constant dense<0xFF800000> : vector<2x8xf32>
    %61 = vector.multi_reduction <maximumf>, %60, %cst_26 [2] : vector<2x8x8xf32> to vector<2x8xf32>
    %62 = vector.shape_cast %61 : vector<2x8xf32> to vector<2x8x1xf32>
    %63 = vector.broadcast %62 : vector<2x8x1xf32> to vector<2x8x8xf32>
    %64 = arith.subf %60, %63 : vector<2x8x8xf32>
    %65 = math.exp %64 : vector<2x8x8xf32>
    %cst_27 = arith.constant dense<0.000000e+00> : vector<2x8xf32>
    %66 = vector.multi_reduction <add>, %65, %cst_27 [2] : vector<2x8x8xf32> to vector<2x8xf32>
    %67 = vector.shape_cast %66 : vector<2x8xf32> to vector<2x8x1xf32>
    %68 = tpu.reciprocal %67 {approx = true} : vector<2x8x1xf32> -> vector<2x8x1xf32>
    %69 = vector.broadcast %68 : vector<2x8x1xf32> to vector<2x8x8xf32>
    %70 = arith.mulf %65, %69 : vector<2x8x8xf32>
    "tpu.trace_start"() <{level = 10 : i32, message = "bqk,bkd->bqd"}> : () -> ()
    %cst_28 = arith.constant dense<0.000000e+00> : vector<2x8x8xf32>
    %71 = tpu.matmul %70, %55, %cst_28 {dimension_numbers = #tpu.dot_dimension_numbers<[2], [1], [1], [2], [0, 0, 0, 1, 1, 2], [0], [0]>} : vector<2x8x8xf32>, vector<2x8x8xf32>, vector<2x8x8xf32> -> vector<2x8x8xf32>
    "tpu.trace_stop"() : () -> ()
    %72 = vector.extract_strided_slice %33 {offsets = [0, 0, 16], sizes = [2, 8, 8], strides = [1, 1, 1]} : vector<2x8x96xf32> to vector<2x8x8xf32>
    %73 = vector.extract_strided_slice %33 {offsets = [0, 0, 48], sizes = [2, 8, 8], strides = [1, 1, 1]} : vector<2x8x96xf32> to vector<2x8x8xf32>
    %74 = vector.extract_strided_slice %33 {offsets = [0, 0, 80], sizes = [2, 8, 8], strides = [1, 1, 1]} : vector<2x8x96xf32> to vector<2x8x8xf32>
    "tpu.trace_start"() <{level = 10 : i32, message = "bqd,bkd->bqk"}> : () -> ()
    %cst_29 = arith.constant dense<0.000000e+00> : vector<2x8x8xf32>
    %75 = tpu.matmul %72, %73, %cst_29 {dimension_numbers = #tpu.dot_dimension_numbers<[2], [2], [1], [1], [0, 0, 0, 1, 1, 1], [0], [0]>} : vector<2x8x8xf32>, vector<2x8x8xf32>, vector<2x8x8xf32> -> vector<2x8x8xf32>
    "tpu.trace_stop"() : () -> ()
    %cst_30 = arith.constant 0.353553385 : f32
    %76 = vector.broadcast %cst_30 : f32 to vector<2x8x8xf32>
    %77 = arith.mulf %75, %76 : vector<2x8x8xf32>
    %78 = vector.broadcast %25 : vector<2x1x8xf32> to vector<2x8x8xf32>
    %79 = arith.addf %77, %78 : vector<2x8x8xf32>
    %cst_31 = arith.constant dense<0xFF800000> : vector<2x8xf32>
    %80 = vector.multi_reduction <maximumf>, %79, %cst_31 [2] : vector<2x8x8xf32> to vector<2x8xf32>
    %81 = vector.shape_cast %80 : vector<2x8xf32> to vector<2x8x1xf32>
    %82 = vector.broadcast %81 : vector<2x8x1xf32> to vector<2x8x8xf32>
    %83 = arith.subf %79, %82 : vector<2x8x8xf32>
    %84 = math.exp %83 : vector<2x8x8xf32>
    %cst_32 = arith.constant dense<0.000000e+00> : vector<2x8xf32>
    %85 = vector.multi_reduction <add>, %84, %cst_32 [2] : vector<2x8x8xf32> to vector<2x8xf32>
    %86 = vector.shape_cast %85 : vector<2x8xf32> to vector<2x8x1xf32>
    %87 = tpu.reciprocal %86 {approx = true} : vector<2x8x1xf32> -> vector<2x8x1xf32>
    %88 = vector.broadcast %87 : vector<2x8x1xf32> to vector<2x8x8xf32>
    %89 = arith.mulf %84, %88 : vector<2x8x8xf32>
    "tpu.trace_start"() <{level = 10 : i32, message = "bqk,bkd->bqd"}> : () -> ()
    %cst_33 = arith.constant dense<0.000000e+00> : vector<2x8x8xf32>
    %90 = tpu.matmul %89, %74, %cst_33 {dimension_numbers = #tpu.dot_dimension_numbers<[2], [1], [1], [2], [0, 0, 0, 1, 1, 2], [0], [0]>} : vector<2x8x8xf32>, vector<2x8x8xf32>, vector<2x8x8xf32> -> vector<2x8x8xf32>
    "tpu.trace_stop"() : () -> ()
    %91 = vector.extract_strided_slice %33 {offsets = [0, 0, 24], sizes = [2, 8, 8], strides = [1, 1, 1]} : vector<2x8x96xf32> to vector<2x8x8xf32>
    %92 = vector.extract_strided_slice %33 {offsets = [0, 0, 56], sizes = [2, 8, 8], strides = [1, 1, 1]} : vector<2x8x96xf32> to vector<2x8x8xf32>
    %93 = vector.extract_strided_slice %33 {offsets = [0, 0, 88], sizes = [2, 8, 8], strides = [1, 1, 1]} : vector<2x8x96xf32> to vector<2x8x8xf32>
    "tpu.trace_start"() <{level = 10 : i32, message = "bqd,bkd->bqk"}> : () -> ()
    %cst_34 = arith.constant dense<0.000000e+00> : vector<2x8x8xf32>
    %94 = tpu.matmul %91, %92, %cst_34 {dimension_numbers = #tpu.dot_dimension_numbers<[2], [2], [1], [1], [0, 0, 0, 1, 1, 1], [0], [0]>} : vector<2x8x8xf32>, vector<2x8x8xf32>, vector<2x8x8xf32> -> vector<2x8x8xf32>
    "tpu.trace_stop"() : () -> ()
    %cst_35 = arith.constant 0.353553385 : f32
    %95 = vector.broadcast %cst_35 : f32 to vector<2x8x8xf32>
    %96 = arith.mulf %94, %95 : vector<2x8x8xf32>
    %97 = vector.broadcast %25 : vector<2x1x8xf32> to vector<2x8x8xf32>
    %98 = arith.addf %96, %97 : vector<2x8x8xf32>
    %cst_36 = arith.constant dense<0xFF800000> : vector<2x8xf32>
    %99 = vector.multi_reduction <maximumf>, %98, %cst_36 [2] : vector<2x8x8xf32> to vector<2x8xf32>
    %100 = vector.shape_cast %99 : vector<2x8xf32> to vector<2x8x1xf32>
    %101 = vector.broadcast %100 : vector<2x8x1xf32> to vector<2x8x8xf32>
    %102 = arith.subf %98, %101 : vector<2x8x8xf32>
    %103 = math.exp %102 : vector<2x8x8xf32>
    %cst_37 = arith.constant dense<0.000000e+00> : vector<2x8xf32>
    %104 = vector.multi_reduction <add>, %103, %cst_37 [2] : vector<2x8x8xf32> to vector<2x8xf32>
    %105 = vector.shape_cast %104 : vector<2x8xf32> to vector<2x8x1xf32>
    %106 = tpu.reciprocal %105 {approx = true} : vector<2x8x1xf32> -> vector<2x8x1xf32>
    %107 = vector.broadcast %106 : vector<2x8x1xf32> to vector<2x8x8xf32>
    %108 = arith.mulf %103, %107 : vector<2x8x8xf32>
    "tpu.trace_start"() <{level = 10 : i32, message = "bqk,bkd->bqd"}> : () -> ()
    %cst_38 = arith.constant dense<0.000000e+00> : vector<2x8x8xf32>
    %109 = tpu.matmul %108, %93, %cst_38 {dimension_numbers = #tpu.dot_dimension_numbers<[2], [1], [1], [2], [0, 0, 0, 1, 1, 2], [0], [0]>} : vector<2x8x8xf32>, vector<2x8x8xf32>, vector<2x8x8xf32> -> vector<2x8x8xf32>
    "tpu.trace_stop"() : () -> ()
    %110 = tpu.concatenate %52, %71, %90, %109 in 2 : vector<2x8x8xf32>, vector<2x8x8xf32>, vector<2x8x8xf32>, vector<2x8x8xf32> -> vector<2x8x32xf32>
    %111 = vector.shape_cast %110 : vector<2x8x32xf32> to vector<16x32xf32>
    %c0_39 = arith.constant 0 : index
    %c0_40 = arith.constant 0 : index
    %c0_41 = arith.constant 0 : index
    %112 = vector.load %arg7[%c0_39, %c0_40, %c0_41] : memref<2x32x32xf32, #tpu.memory_space<vmem>>, vector<1x32x32xf32>
    %113 = vector.shape_cast %112 : vector<1x32x32xf32> to vector<32x32xf32>
    %cst_42 = arith.constant dense<0.000000e+00> : vector<16x32xf32>
    %114 = tpu.matmul %111, %113, %cst_42 {dimension_numbers = #tpu.dot_dimension_numbers<[1], [0], [0], [1], [0, 0, 1, 1], [], []>} : vector<16x32xf32>, vector<32x32xf32>, vector<16x32xf32> -> vector<16x32xf32>
    %c0_43 = arith.constant 0 : index
    %c0_44 = arith.constant 0 : index
    %c0_45 = arith.constant 0 : index
    %115 = vector.load %arg8[%c0_43, %c0_44, %c0_45] : memref<2x1x32xf32, #tpu.memory_space<vmem>>, vector<1x1x32xf32>
    %116 = vector.shape_cast %115 : vector<1x1x32xf32> to vector<1x32xf32>
    %117 = vector.broadcast %116 : vector<1x32xf32> to vector<16x32xf32>
    %118 = arith.addf %114, %117 : vector<16x32xf32>
    %119 = arith.addf %118, %24 : vector<16x32xf32>
    %c0_46 = arith.constant 0 : index
    %c0_47 = arith.constant 0 : index
    %c0_48 = arith.constant 0 : index
    %120 = vector.load %arg9[%c0_46, %c0_47, %c0_48] : memref<2x1x32xf32, #tpu.memory_space<vmem>>, vector<1x1x32xf32>
    %121 = vector.shape_cast %120 : vector<1x1x32xf32> to vector<1x32xf32>
    %c0_49 = arith.constant 0 : index
    %c0_50 = arith.constant 0 : index
    %c0_51 = arith.constant 0 : index
    %122 = vector.load %arg10[%c0_49, %c0_50, %c0_51] : memref<2x1x32xf32, #tpu.memory_space<vmem>>, vector<1x1x32xf32>
    %123 = vector.shape_cast %122 : vector<1x1x32xf32> to vector<1x32xf32>
    %cst_52 = arith.constant dense<0.000000e+00> : vector<16xf32>
    %124 = vector.multi_reduction <add>, %119, %cst_52 [1] : vector<16x32xf32> to vector<16xf32>
    %125 = vector.shape_cast %124 : vector<16xf32> to vector<16x1xf32>
    %cst_53 = arith.constant 3.200000e+01 : f32
    %126 = vector.broadcast %cst_53 : f32 to vector<16x1xf32>
    %127 = arith.divf %125, %126 : vector<16x1xf32>
    %128 = vector.broadcast %127 : vector<16x1xf32> to vector<16x32xf32>
    %129 = arith.subf %119, %128 : vector<16x32xf32>
    %130 = arith.mulf %129, %129 : vector<16x32xf32>
    %cst_54 = arith.constant dense<0.000000e+00> : vector<16xf32>
    %131 = vector.multi_reduction <add>, %130, %cst_54 [1] : vector<16x32xf32> to vector<16xf32>
    %132 = vector.shape_cast %131 : vector<16xf32> to vector<16x1xf32>
    %cst_55 = arith.constant 3.200000e+01 : f32
    %133 = vector.broadcast %cst_55 : f32 to vector<16x1xf32>
    %134 = arith.divf %132, %133 : vector<16x1xf32>
    %135 = vector.broadcast %127 : vector<16x1xf32> to vector<16x32xf32>
    %136 = arith.subf %119, %135 : vector<16x32xf32>
    %cst_56 = arith.constant 9.99999996E-13 : f32
    %137 = vector.broadcast %cst_56 : f32 to vector<16x1xf32>
    %138 = arith.addf %134, %137 : vector<16x1xf32>
    %139 = math.rsqrt %138 : vector<16x1xf32>
    %140 = vector.broadcast %139 : vector<16x1xf32> to vector<16x32xf32>
    %141 = arith.mulf %136, %140 : vector<16x32xf32>
    %142 = vector.broadcast %121 : vector<1x32xf32> to vector<16x32xf32>
    %143 = arith.mulf %141, %142 : vector<16x32xf32>
    %144 = vector.broadcast %123 : vector<1x32xf32> to vector<16x32xf32>
    %145 = arith.addf %143, %144 : vector<16x32xf32>
    %c0_57 = arith.constant 0 : index
    %c0_58 = arith.constant 0 : index
    %c0_59 = arith.constant 0 : index
    %146 = vector.load %arg11[%c0_57, %c0_58, %c0_59] : memref<2x32x64xf32, #tpu.memory_space<vmem>>, vector<1x32x64xf32>
    %147 = vector.shape_cast %146 : vector<1x32x64xf32> to vector<32x64xf32>
    %cst_60 = arith.constant dense<0.000000e+00> : vector<16x64xf32>
    %148 = tpu.matmul %145, %147, %cst_60 {dimension_numbers = #tpu.dot_dimension_numbers<[1], [0], [0], [1], [0, 0, 1, 1], [], []>} : vector<16x32xf32>, vector<32x64xf32>, vector<16x64xf32> -> vector<16x64xf32>
    %c0_61 = arith.constant 0 : index
    %c0_62 = arith.constant 0 : index
    %c0_63 = arith.constant 0 : index
    %149 = vector.load %arg12[%c0_61, %c0_62, %c0_63] : memref<2x1x64xf32, #tpu.memory_space<vmem>>, vector<1x1x64xf32>
    %150 = vector.shape_cast %149 : vector<1x1x64xf32> to vector<1x64xf32>
    %151 = vector.broadcast %150 : vector<1x64xf32> to vector<16x64xf32>
    %152 = arith.addf %148, %151 : vector<16x64xf32>
    %cst_64 = arith.constant 5.000000e-01 : f32
    %153 = vector.broadcast %cst_64 : f32 to vector<16x64xf32>
    %154 = arith.mulf %153, %152 : vector<16x64xf32>
    %cst_65 = arith.constant 0.707106769 : f32
    %155 = vector.broadcast %cst_65 : f32 to vector<16x64xf32>
    %156 = arith.mulf %152, %155 : vector<16x64xf32>
    %157 = math.erf %156 : vector<16x64xf32>
    %cst_66 = arith.constant 1.000000e+00 : f32
    %158 = vector.broadcast %cst_66 : f32 to vector<16x64xf32>
    %159 = arith.addf %158, %157 : vector<16x64xf32>
    %160 = arith.mulf %154, %159 : vector<16x64xf32>
    %c0_67 = arith.constant 0 : index
    %c0_68 = arith.constant 0 : index
    %c0_69 = arith.constant 0 : index
    %161 = vector.load %arg13[%c0_67, %c0_68, %c0_69] : memref<2x64x32xf32, #tpu.memory_space<vmem>>, vector<1x64x32xf32>
    %162 = vector.shape_cast %161 : vector<1x64x32xf32> to vector<64x32xf32>
    %cst_70 = arith.constant dense<0.000000e+00> : vector<16x32xf32>
    %163 = tpu.matmul %160, %162, %cst_70 {dimension_numbers = #tpu.dot_dimension_numbers<[1], [0], [0], [1], [0, 0, 1, 1], [], []>} : vector<16x64xf32>, vector<64x32xf32>, vector<16x32xf32> -> vector<16x32xf32>
    %c0_71 = arith.constant 0 : index
    %c0_72 = arith.constant 0 : index
    %c0_73 = arith.constant 0 : index
    %164 = vector.load %arg14[%c0_71, %c0_72, %c0_73] : memref<2x1x32xf32, #tpu.memory_space<vmem>>, vector<1x1x32xf32>
    %165 = vector.shape_cast %164 : vector<1x1x32xf32> to vector<1x32xf32>
    %166 = vector.broadcast %165 : vector<1x32xf32> to vector<16x32xf32>
    %167 = arith.addf %163, %166 : vector<16x32xf32>
    %168 = arith.addf %167, %145 : vector<16x32xf32>
    %c0_74 = arith.constant 0 : index
    %c0_75 = arith.constant 0 : index
    %c0_76 = arith.constant 0 : index
    %169 = vector.load %arg15[%c0_74, %c0_75, %c0_76] : memref<2x1x32xf32, #tpu.memory_space<vmem>>, vector<1x1x32xf32>
    %170 = vector.shape_cast %169 : vector<1x1x32xf32> to vector<1x32xf32>
    %c0_77 = arith.constant 0 : index
    %c0_78 = arith.constant 0 : index
    %c0_79 = arith.constant 0 : index
    %171 = vector.load %arg16[%c0_77, %c0_78, %c0_79] : memref<2x1x32xf32, #tpu.memory_space<vmem>>, vector<1x1x32xf32>
    %172 = vector.shape_cast %171 : vector<1x1x32xf32> to vector<1x32xf32>
    %cst_80 = arith.constant dense<0.000000e+00> : vector<16xf32>
    %173 = vector.multi_reduction <add>, %168, %cst_80 [1] : vector<16x32xf32> to vector<16xf32>
    %174 = vector.shape_cast %173 : vector<16xf32> to vector<16x1xf32>
    %cst_81 = arith.constant 3.200000e+01 : f32
    %175 = vector.broadcast %cst_81 : f32 to vector<16x1xf32>
    %176 = arith.divf %174, %175 : vector<16x1xf32>
    %177 = vector.broadcast %176 : vector<16x1xf32> to vector<16x32xf32>
    %178 = arith.subf %168, %177 : vector<16x32xf32>
    %179 = arith.mulf %178, %178 : vector<16x32xf32>
    %cst_82 = arith.constant dense<0.000000e+00> : vector<16xf32>
    %180 = vector.multi_reduction <add>, %179, %cst_82 [1] : vector<16x32xf32> to vector<16xf32>
    %181 = vector.shape_cast %180 : vector<16xf32> to vector<16x1xf32>
    %cst_83 = arith.constant 3.200000e+01 : f32
    %182 = vector.broadcast %cst_83 : f32 to vector<16x1xf32>
    %183 = arith.divf %181, %182 : vector<16x1xf32>
    %184 = vector.broadcast %176 : vector<16x1xf32> to vector<16x32xf32>
    %185 = arith.subf %168, %184 : vector<16x32xf32>
    %cst_84 = arith.constant 9.99999996E-13 : f32
    %186 = vector.broadcast %cst_84 : f32 to vector<16x1xf32>
    %187 = arith.addf %183, %186 : vector<16x1xf32>
    %188 = math.rsqrt %187 : vector<16x1xf32>
    %189 = vector.broadcast %188 : vector<16x1xf32> to vector<16x32xf32>
    %190 = arith.mulf %185, %189 : vector<16x32xf32>
    %191 = vector.broadcast %170 : vector<1x32xf32> to vector<16x32xf32>
    %192 = arith.mulf %190, %191 : vector<16x32xf32>
    %193 = vector.broadcast %172 : vector<1x32xf32> to vector<16x32xf32>
    %194 = arith.addf %192, %193 : vector<16x32xf32>
    %c1 = arith.constant 1 : index
    %c0_85 = arith.constant 0 : index
    %c0_86 = arith.constant 0 : index
    %195 = vector.load %arg5[%c1, %c0_85, %c0_86] : memref<2x32x96xf32, #tpu.memory_space<vmem>>, vector<1x32x96xf32>
    %196 = vector.shape_cast %195 : vector<1x32x96xf32> to vector<32x96xf32>
    %cst_87 = arith.constant dense<0.000000e+00> : vector<16x96xf32>
    %197 = tpu.matmul %194, %196, %cst_87 {dimension_numbers = #tpu.dot_dimension_numbers<[1], [0], [0], [1], [0, 0, 1, 1], [], []>} : vector<16x32xf32>, vector<32x96xf32>, vector<16x96xf32> -> vector<16x96xf32>
    %c1_88 = arith.constant 1 : index
    %c0_89 = arith.constant 0 : index
    %c0_90 = arith.constant 0 : index
    %198 = vector.load %arg6[%c1_88, %c0_89, %c0_90] : memref<2x1x96xf32, #tpu.memory_space<vmem>>, vector<1x1x96xf32>
    %199 = vector.shape_cast %198 : vector<1x1x96xf32> to vector<1x96xf32>
    %200 = vector.broadcast %199 : vector<1x96xf32> to vector<16x96xf32>
    %201 = arith.addf %197, %200 : vector<16x96xf32>
    %202 = vector.shape_cast %201 : vector<16x96xf32> to vector<2x8x96xf32>
    %203 = vector.extract_strided_slice %202 {offsets = [0, 0, 0], sizes = [2, 8, 8], strides = [1, 1, 1]} : vector<2x8x96xf32> to vector<2x8x8xf32>
    %204 = vector.extract_strided_slice %202 {offsets = [0, 0, 32], sizes = [2, 8, 8], strides = [1, 1, 1]} : vector<2x8x96xf32> to vector<2x8x8xf32>
    %205 = vector.extract_strided_slice %202 {offsets = [0, 0, 64], sizes = [2, 8, 8], strides = [1, 1, 1]} : vector<2x8x96xf32> to vector<2x8x8xf32>
    "tpu.trace_start"() <{level = 10 : i32, message = "bqd,bkd->bqk"}> : () -> ()
    %cst_91 = arith.constant dense<0.000000e+00> : vector<2x8x8xf32>
    %206 = tpu.matmul %203, %204, %cst_91 {dimension_numbers = #tpu.dot_dimension_numbers<[2], [2], [1], [1], [0, 0, 0, 1, 1, 1], [0], [0]>} : vector<2x8x8xf32>, vector<2x8x8xf32>, vector<2x8x8xf32> -> vector<2x8x8xf32>
    "tpu.trace_stop"() : () -> ()
    %cst_92 = arith.constant 0.353553385 : f32
    %207 = vector.broadcast %cst_92 : f32 to vector<2x8x8xf32>
    %208 = arith.mulf %206, %207 : vector<2x8x8xf32>
    %209 = vector.broadcast %25 : vector<2x1x8xf32> to vector<2x8x8xf32>
    %210 = arith.addf %208, %209 : vector<2x8x8xf32>
    %cst_93 = arith.constant dense<0xFF800000> : vector<2x8xf32>
    %211 = vector.multi_reduction <maximumf>, %210, %cst_93 [2] : vector<2x8x8xf32> to vector<2x8xf32>
    %212 = vector.shape_cast %211 : vector<2x8xf32> to vector<2x8x1xf32>
    %213 = vector.broadcast %212 : vector<2x8x1xf32> to vector<2x8x8xf32>
    %214 = arith.subf %210, %213 : vector<2x8x8xf32>
    %215 = math.exp %214 : vector<2x8x8xf32>
    %cst_94 = arith.constant dense<0.000000e+00> : vector<2x8xf32>
    %216 = vector.multi_reduction <add>, %215, %cst_94 [2] : vector<2x8x8xf32> to vector<2x8xf32>
    %217 = vector.shape_cast %216 : vector<2x8xf32> to vector<2x8x1xf32>
    %218 = tpu.reciprocal %217 {approx = true} : vector<2x8x1xf32> -> vector<2x8x1xf32>
    %219 = vector.broadcast %218 : vector<2x8x1xf32> to vector<2x8x8xf32>
    %220 = arith.mulf %215, %219 : vector<2x8x8xf32>
    "tpu.trace_start"() <{level = 10 : i32, message = "bqk,bkd->bqd"}> : () -> ()
    %cst_95 = arith.constant dense<0.000000e+00> : vector<2x8x8xf32>
    %221 = tpu.matmul %220, %205, %cst_95 {dimension_numbers = #tpu.dot_dimension_numbers<[2], [1], [1], [2], [0, 0, 0, 1, 1, 2], [0], [0]>} : vector<2x8x8xf32>, vector<2x8x8xf32>, vector<2x8x8xf32> -> vector<2x8x8xf32>
    "tpu.trace_stop"() : () -> ()
    %222 = vector.extract_strided_slice %202 {offsets = [0, 0, 8], sizes = [2, 8, 8], strides = [1, 1, 1]} : vector<2x8x96xf32> to vector<2x8x8xf32>
    %223 = vector.extract_strided_slice %202 {offsets = [0, 0, 40], sizes = [2, 8, 8], strides = [1, 1, 1]} : vector<2x8x96xf32> to vector<2x8x8xf32>
    %224 = vector.extract_strided_slice %202 {offsets = [0, 0, 72], sizes = [2, 8, 8], strides = [1, 1, 1]} : vector<2x8x96xf32> to vector<2x8x8xf32>
    "tpu.trace_start"() <{level = 10 : i32, message = "bqd,bkd->bqk"}> : () -> ()
    %cst_96 = arith.constant dense<0.000000e+00> : vector<2x8x8xf32>
    %225 = tpu.matmul %222, %223, %cst_96 {dimension_numbers = #tpu.dot_dimension_numbers<[2], [2], [1], [1], [0, 0, 0, 1, 1, 1], [0], [0]>} : vector<2x8x8xf32>, vector<2x8x8xf32>, vector<2x8x8xf32> -> vector<2x8x8xf32>
    "tpu.trace_stop"() : () -> ()
    %cst_97 = arith.constant 0.353553385 : f32
    %226 = vector.broadcast %cst_97 : f32 to vector<2x8x8xf32>
    %227 = arith.mulf %225, %226 : vector<2x8x8xf32>
    %228 = vector.broadcast %25 : vector<2x1x8xf32> to vector<2x8x8xf32>
    %229 = arith.addf %227, %228 : vector<2x8x8xf32>
    %cst_98 = arith.constant dense<0xFF800000> : vector<2x8xf32>
    %230 = vector.multi_reduction <maximumf>, %229, %cst_98 [2] : vector<2x8x8xf32> to vector<2x8xf32>
    %231 = vector.shape_cast %230 : vector<2x8xf32> to vector<2x8x1xf32>
    %232 = vector.broadcast %231 : vector<2x8x1xf32> to vector<2x8x8xf32>
    %233 = arith.subf %229, %232 : vector<2x8x8xf32>
    %234 = math.exp %233 : vector<2x8x8xf32>
    %cst_99 = arith.constant dense<0.000000e+00> : vector<2x8xf32>
    %235 = vector.multi_reduction <add>, %234, %cst_99 [2] : vector<2x8x8xf32> to vector<2x8xf32>
    %236 = vector.shape_cast %235 : vector<2x8xf32> to vector<2x8x1xf32>
    %237 = tpu.reciprocal %236 {approx = true} : vector<2x8x1xf32> -> vector<2x8x1xf32>
    %238 = vector.broadcast %237 : vector<2x8x1xf32> to vector<2x8x8xf32>
    %239 = arith.mulf %234, %238 : vector<2x8x8xf32>
    "tpu.trace_start"() <{level = 10 : i32, message = "bqk,bkd->bqd"}> : () -> ()
    %cst_100 = arith.constant dense<0.000000e+00> : vector<2x8x8xf32>
    %240 = tpu.matmul %239, %224, %cst_100 {dimension_numbers = #tpu.dot_dimension_numbers<[2], [1], [1], [2], [0, 0, 0, 1, 1, 2], [0], [0]>} : vector<2x8x8xf32>, vector<2x8x8xf32>, vector<2x8x8xf32> -> vector<2x8x8xf32>
    "tpu.trace_stop"() : () -> ()
    %241 = vector.extract_strided_slice %202 {offsets = [0, 0, 16], sizes = [2, 8, 8], strides = [1, 1, 1]} : vector<2x8x96xf32> to vector<2x8x8xf32>
    %242 = vector.extract_strided_slice %202 {offsets = [0, 0, 48], sizes = [2, 8, 8], strides = [1, 1, 1]} : vector<2x8x96xf32> to vector<2x8x8xf32>
    %243 = vector.extract_strided_slice %202 {offsets = [0, 0, 80], sizes = [2, 8, 8], strides = [1, 1, 1]} : vector<2x8x96xf32> to vector<2x8x8xf32>
    "tpu.trace_start"() <{level = 10 : i32, message = "bqd,bkd->bqk"}> : () -> ()
    %cst_101 = arith.constant dense<0.000000e+00> : vector<2x8x8xf32>
    %244 = tpu.matmul %241, %242, %cst_101 {dimension_numbers = #tpu.dot_dimension_numbers<[2], [2], [1], [1], [0, 0, 0, 1, 1, 1], [0], [0]>} : vector<2x8x8xf32>, vector<2x8x8xf32>, vector<2x8x8xf32> -> vector<2x8x8xf32>
    "tpu.trace_stop"() : () -> ()
    %cst_102 = arith.constant 0.353553385 : f32
    %245 = vector.broadcast %cst_102 : f32 to vector<2x8x8xf32>
    %246 = arith.mulf %244, %245 : vector<2x8x8xf32>
    %247 = vector.broadcast %25 : vector<2x1x8xf32> to vector<2x8x8xf32>
    %248 = arith.addf %246, %247 : vector<2x8x8xf32>
    %cst_103 = arith.constant dense<0xFF800000> : vector<2x8xf32>
    %249 = vector.multi_reduction <maximumf>, %248, %cst_103 [2] : vector<2x8x8xf32> to vector<2x8xf32>
    %250 = vector.shape_cast %249 : vector<2x8xf32> to vector<2x8x1xf32>
    %251 = vector.broadcast %250 : vector<2x8x1xf32> to vector<2x8x8xf32>
    %252 = arith.subf %248, %251 : vector<2x8x8xf32>
    %253 = math.exp %252 : vector<2x8x8xf32>
    %cst_104 = arith.constant dense<0.000000e+00> : vector<2x8xf32>
    %254 = vector.multi_reduction <add>, %253, %cst_104 [2] : vector<2x8x8xf32> to vector<2x8xf32>
    %255 = vector.shape_cast %254 : vector<2x8xf32> to vector<2x8x1xf32>
    %256 = tpu.reciprocal %255 {approx = true} : vector<2x8x1xf32> -> vector<2x8x1xf32>
    %257 = vector.broadcast %256 : vector<2x8x1xf32> to vector<2x8x8xf32>
    %258 = arith.mulf %253, %257 : vector<2x8x8xf32>
    "tpu.trace_start"() <{level = 10 : i32, message = "bqk,bkd->bqd"}> : () -> ()
    %cst_105 = arith.constant dense<0.000000e+00> : vector<2x8x8xf32>
    %259 = tpu.matmul %258, %243, %cst_105 {dimension_numbers = #tpu.dot_dimension_numbers<[2], [1], [1], [2], [0, 0, 0, 1, 1, 2], [0], [0]>} : vector<2x8x8xf32>, vector<2x8x8xf32>, vector<2x8x8xf32> -> vector<2x8x8xf32>
    "tpu.trace_stop"() : () -> ()
    %260 = vector.extract_strided_slice %202 {offsets = [0, 0, 24], sizes = [2, 8, 8], strides = [1, 1, 1]} : vector<2x8x96xf32> to vector<2x8x8xf32>
    %261 = vector.extract_strided_slice %202 {offsets = [0, 0, 56], sizes = [2, 8, 8], strides = [1, 1, 1]} : vector<2x8x96xf32> to vector<2x8x8xf32>
    %262 = vector.extract_strided_slice %202 {offsets = [0, 0, 88], sizes = [2, 8, 8], strides = [1, 1, 1]} : vector<2x8x96xf32> to vector<2x8x8xf32>
    "tpu.trace_start"() <{level = 10 : i32, message = "bqd,bkd->bqk"}> : () -> ()
    %cst_106 = arith.constant dense<0.000000e+00> : vector<2x8x8xf32>
    %263 = tpu.matmul %260, %261, %cst_106 {dimension_numbers = #tpu.dot_dimension_numbers<[2], [2], [1], [1], [0, 0, 0, 1, 1, 1], [0], [0]>} : vector<2x8x8xf32>, vector<2x8x8xf32>, vector<2x8x8xf32> -> vector<2x8x8xf32>
    "tpu.trace_stop"() : () -> ()
    %cst_107 = arith.constant 0.353553385 : f32
    %264 = vector.broadcast %cst_107 : f32 to vector<2x8x8xf32>
    %265 = arith.mulf %263, %264 : vector<2x8x8xf32>
    %266 = vector.broadcast %25 : vector<2x1x8xf32> to vector<2x8x8xf32>
    %267 = arith.addf %265, %266 : vector<2x8x8xf32>
    %cst_108 = arith.constant dense<0xFF800000> : vector<2x8xf32>
    %268 = vector.multi_reduction <maximumf>, %267, %cst_108 [2] : vector<2x8x8xf32> to vector<2x8xf32>
    %269 = vector.shape_cast %268 : vector<2x8xf32> to vector<2x8x1xf32>
    %270 = vector.broadcast %269 : vector<2x8x1xf32> to vector<2x8x8xf32>
    %271 = arith.subf %267, %270 : vector<2x8x8xf32>
    %272 = math.exp %271 : vector<2x8x8xf32>
    %cst_109 = arith.constant dense<0.000000e+00> : vector<2x8xf32>
    %273 = vector.multi_reduction <add>, %272, %cst_109 [2] : vector<2x8x8xf32> to vector<2x8xf32>
    %274 = vector.shape_cast %273 : vector<2x8xf32> to vector<2x8x1xf32>
    %275 = tpu.reciprocal %274 {approx = true} : vector<2x8x1xf32> -> vector<2x8x1xf32>
    %276 = vector.broadcast %275 : vector<2x8x1xf32> to vector<2x8x8xf32>
    %277 = arith.mulf %272, %276 : vector<2x8x8xf32>
    "tpu.trace_start"() <{level = 10 : i32, message = "bqk,bkd->bqd"}> : () -> ()
    %cst_110 = arith.constant dense<0.000000e+00> : vector<2x8x8xf32>
    %278 = tpu.matmul %277, %262, %cst_110 {dimension_numbers = #tpu.dot_dimension_numbers<[2], [1], [1], [2], [0, 0, 0, 1, 1, 2], [0], [0]>} : vector<2x8x8xf32>, vector<2x8x8xf32>, vector<2x8x8xf32> -> vector<2x8x8xf32>
    "tpu.trace_stop"() : () -> ()
    %279 = tpu.concatenate %221, %240, %259, %278 in 2 : vector<2x8x8xf32>, vector<2x8x8xf32>, vector<2x8x8xf32>, vector<2x8x8xf32> -> vector<2x8x32xf32>
    %280 = vector.shape_cast %279 : vector<2x8x32xf32> to vector<16x32xf32>
    %c1_111 = arith.constant 1 : index
    %c0_112 = arith.constant 0 : index
    %c0_113 = arith.constant 0 : index
    %281 = vector.load %arg7[%c1_111, %c0_112, %c0_113] : memref<2x32x32xf32, #tpu.memory_space<vmem>>, vector<1x32x32xf32>
    %282 = vector.shape_cast %281 : vector<1x32x32xf32> to vector<32x32xf32>
    %cst_114 = arith.constant dense<0.000000e+00> : vector<16x32xf32>
    %283 = tpu.matmul %280, %282, %cst_114 {dimension_numbers = #tpu.dot_dimension_numbers<[1], [0], [0], [1], [0, 0, 1, 1], [], []>} : vector<16x32xf32>, vector<32x32xf32>, vector<16x32xf32> -> vector<16x32xf32>
    %c1_115 = arith.constant 1 : index
    %c0_116 = arith.constant 0 : index
    %c0_117 = arith.constant 0 : index
    %284 = vector.load %arg8[%c1_115, %c0_116, %c0_117] : memref<2x1x32xf32, #tpu.memory_space<vmem>>, vector<1x1x32xf32>
    %285 = vector.shape_cast %284 : vector<1x1x32xf32> to vector<1x32xf32>
    %286 = vector.broadcast %285 : vector<1x32xf32> to vector<16x32xf32>
    %287 = arith.addf %283, %286 : vector<16x32xf32>
    %288 = arith.addf %287, %194 : vector<16x32xf32>
    %c1_118 = arith.constant 1 : index
    %c0_119 = arith.constant 0 : index
    %c0_120 = arith.constant 0 : index
    %289 = vector.load %arg9[%c1_118, %c0_119, %c0_120] : memref<2x1x32xf32, #tpu.memory_space<vmem>>, vector<1x1x32xf32>
    %290 = vector.shape_cast %289 : vector<1x1x32xf32> to vector<1x32xf32>
    %c1_121 = arith.constant 1 : index
    %c0_122 = arith.constant 0 : index
    %c0_123 = arith.constant 0 : index
    %291 = vector.load %arg10[%c1_121, %c0_122, %c0_123] : memref<2x1x32xf32, #tpu.memory_space<vmem>>, vector<1x1x32xf32>
    %292 = vector.shape_cast %291 : vector<1x1x32xf32> to vector<1x32xf32>
    %cst_124 = arith.constant dense<0.000000e+00> : vector<16xf32>
    %293 = vector.multi_reduction <add>, %288, %cst_124 [1] : vector<16x32xf32> to vector<16xf32>
    %294 = vector.shape_cast %293 : vector<16xf32> to vector<16x1xf32>
    %cst_125 = arith.constant 3.200000e+01 : f32
    %295 = vector.broadcast %cst_125 : f32 to vector<16x1xf32>
    %296 = arith.divf %294, %295 : vector<16x1xf32>
    %297 = vector.broadcast %296 : vector<16x1xf32> to vector<16x32xf32>
    %298 = arith.subf %288, %297 : vector<16x32xf32>
    %299 = arith.mulf %298, %298 : vector<16x32xf32>
    %cst_126 = arith.constant dense<0.000000e+00> : vector<16xf32>
    %300 = vector.multi_reduction <add>, %299, %cst_126 [1] : vector<16x32xf32> to vector<16xf32>
    %301 = vector.shape_cast %300 : vector<16xf32> to vector<16x1xf32>
    %cst_127 = arith.constant 3.200000e+01 : f32
    %302 = vector.broadcast %cst_127 : f32 to vector<16x1xf32>
    %303 = arith.divf %301, %302 : vector<16x1xf32>
    %304 = vector.broadcast %296 : vector<16x1xf32> to vector<16x32xf32>
    %305 = arith.subf %288, %304 : vector<16x32xf32>
    %cst_128 = arith.constant 9.99999996E-13 : f32
    %306 = vector.broadcast %cst_128 : f32 to vector<16x1xf32>
    %307 = arith.addf %303, %306 : vector<16x1xf32>
    %308 = math.rsqrt %307 : vector<16x1xf32>
    %309 = vector.broadcast %308 : vector<16x1xf32> to vector<16x32xf32>
    %310 = arith.mulf %305, %309 : vector<16x32xf32>
    %311 = vector.broadcast %290 : vector<1x32xf32> to vector<16x32xf32>
    %312 = arith.mulf %310, %311 : vector<16x32xf32>
    %313 = vector.broadcast %292 : vector<1x32xf32> to vector<16x32xf32>
    %314 = arith.addf %312, %313 : vector<16x32xf32>
    %c1_129 = arith.constant 1 : index
    %c0_130 = arith.constant 0 : index
    %c0_131 = arith.constant 0 : index
    %315 = vector.load %arg11[%c1_129, %c0_130, %c0_131] : memref<2x32x64xf32, #tpu.memory_space<vmem>>, vector<1x32x64xf32>
    %316 = vector.shape_cast %315 : vector<1x32x64xf32> to vector<32x64xf32>
    %cst_132 = arith.constant dense<0.000000e+00> : vector<16x64xf32>
    %317 = tpu.matmul %314, %316, %cst_132 {dimension_numbers = #tpu.dot_dimension_numbers<[1], [0], [0], [1], [0, 0, 1, 1], [], []>} : vector<16x32xf32>, vector<32x64xf32>, vector<16x64xf32> -> vector<16x64xf32>
    %c1_133 = arith.constant 1 : index
    %c0_134 = arith.constant 0 : index
    %c0_135 = arith.constant 0 : index
    %318 = vector.load %arg12[%c1_133, %c0_134, %c0_135] : memref<2x1x64xf32, #tpu.memory_space<vmem>>, vector<1x1x64xf32>
    %319 = vector.shape_cast %318 : vector<1x1x64xf32> to vector<1x64xf32>
    %320 = vector.broadcast %319 : vector<1x64xf32> to vector<16x64xf32>
    %321 = arith.addf %317, %320 : vector<16x64xf32>
    %cst_136 = arith.constant 5.000000e-01 : f32
    %322 = vector.broadcast %cst_136 : f32 to vector<16x64xf32>
    %323 = arith.mulf %322, %321 : vector<16x64xf32>
    %cst_137 = arith.constant 0.707106769 : f32
    %324 = vector.broadcast %cst_137 : f32 to vector<16x64xf32>
    %325 = arith.mulf %321, %324 : vector<16x64xf32>
    %326 = math.erf %325 : vector<16x64xf32>
    %cst_138 = arith.constant 1.000000e+00 : f32
    %327 = vector.broadcast %cst_138 : f32 to vector<16x64xf32>
    %328 = arith.addf %327, %326 : vector<16x64xf32>
    %329 = arith.mulf %323, %328 : vector<16x64xf32>
    %c1_139 = arith.constant 1 : index
    %c0_140 = arith.constant 0 : index
    %c0_141 = arith.constant 0 : index
    %330 = vector.load %arg13[%c1_139, %c0_140, %c0_141] : memref<2x64x32xf32, #tpu.memory_space<vmem>>, vector<1x64x32xf32>
    %331 = vector.shape_cast %330 : vector<1x64x32xf32> to vector<64x32xf32>
    %cst_142 = arith.constant dense<0.000000e+00> : vector<16x32xf32>
    %332 = tpu.matmul %329, %331, %cst_142 {dimension_numbers = #tpu.dot_dimension_numbers<[1], [0], [0], [1], [0, 0, 1, 1], [], []>} : vector<16x64xf32>, vector<64x32xf32>, vector<16x32xf32> -> vector<16x32xf32>
    %c1_143 = arith.constant 1 : index
    %c0_144 = arith.constant 0 : index
    %c0_145 = arith.constant 0 : index
    %333 = vector.load %arg14[%c1_143, %c0_144, %c0_145] : memref<2x1x32xf32, #tpu.memory_space<vmem>>, vector<1x1x32xf32>
    %334 = vector.shape_cast %333 : vector<1x1x32xf32> to vector<1x32xf32>
    %335 = vector.broadcast %334 : vector<1x32xf32> to vector<16x32xf32>
    %336 = arith.addf %332, %335 : vector<16x32xf32>
    %337 = arith.addf %336, %314 : vector<16x32xf32>
    %c1_146 = arith.constant 1 : index
    %c0_147 = arith.constant 0 : index
    %c0_148 = arith.constant 0 : index
    %338 = vector.load %arg15[%c1_146, %c0_147, %c0_148] : memref<2x1x32xf32, #tpu.memory_space<vmem>>, vector<1x1x32xf32>
    %339 = vector.shape_cast %338 : vector<1x1x32xf32> to vector<1x32xf32>
    %c1_149 = arith.constant 1 : index
    %c0_150 = arith.constant 0 : index
    %c0_151 = arith.constant 0 : index
    %340 = vector.load %arg16[%c1_149, %c0_150, %c0_151] : memref<2x1x32xf32, #tpu.memory_space<vmem>>, vector<1x1x32xf32>
    %341 = vector.shape_cast %340 : vector<1x1x32xf32> to vector<1x32xf32>
    %cst_152 = arith.constant dense<0.000000e+00> : vector<16xf32>
    %342 = vector.multi_reduction <add>, %337, %cst_152 [1] : vector<16x32xf32> to vector<16xf32>
    %343 = vector.shape_cast %342 : vector<16xf32> to vector<16x1xf32>
    %cst_153 = arith.constant 3.200000e+01 : f32
    %344 = vector.broadcast %cst_153 : f32 to vector<16x1xf32>
    %345 = arith.divf %343, %344 : vector<16x1xf32>
    %346 = vector.broadcast %345 : vector<16x1xf32> to vector<16x32xf32>
    %347 = arith.subf %337, %346 : vector<16x32xf32>
    %348 = arith.mulf %347, %347 : vector<16x32xf32>
    %cst_154 = arith.constant dense<0.000000e+00> : vector<16xf32>
    %349 = vector.multi_reduction <add>, %348, %cst_154 [1] : vector<16x32xf32> to vector<16xf32>
    %350 = vector.shape_cast %349 : vector<16xf32> to vector<16x1xf32>
    %cst_155 = arith.constant 3.200000e+01 : f32
    %351 = vector.broadcast %cst_155 : f32 to vector<16x1xf32>
    %352 = arith.divf %350, %351 : vector<16x1xf32>
    %353 = vector.broadcast %345 : vector<16x1xf32> to vector<16x32xf32>
    %354 = arith.subf %337, %353 : vector<16x32xf32>
    %cst_156 = arith.constant 9.99999996E-13 : f32
    %355 = vector.broadcast %cst_156 : f32 to vector<16x1xf32>
    %356 = arith.addf %352, %355 : vector<16x1xf32>
    %357 = math.rsqrt %356 : vector<16x1xf32>
    %358 = vector.broadcast %357 : vector<16x1xf32> to vector<16x32xf32>
    %359 = arith.mulf %354, %358 : vector<16x32xf32>
    %360 = vector.broadcast %339 : vector<1x32xf32> to vector<16x32xf32>
    %361 = arith.mulf %359, %360 : vector<16x32xf32>
    %362 = vector.broadcast %341 : vector<1x32xf32> to vector<16x32xf32>
    %363 = arith.addf %361, %362 : vector<16x32xf32>
    %364 = vector.shape_cast %363 : vector<16x32xf32> to vector<2x8x32xf32>
    %365 = vector.extract_strided_slice %364 {offsets = [0, 0, 0], sizes = [2, 1, 32], strides = [1, 1, 1]} : vector<2x8x32xf32> to vector<2x1x32xf32>
    %366 = vector.shape_cast %365 : vector<2x1x32xf32> to vector<2x32xf32>
    %c0_157 = arith.constant 0 : index
    %c0_158 = arith.constant 0 : index
    %367 = vector.load %arg17[%c0_157, %c0_158] : memref<32x32xf32, #tpu.memory_space<vmem>>, vector<32x32xf32>
    %cst_159 = arith.constant dense<0.000000e+00> : vector<2x32xf32>
    %368 = tpu.matmul %366, %367, %cst_159 {dimension_numbers = #tpu.dot_dimension_numbers<[1], [0], [0], [1], [0, 0, 1, 1], [], []>} : vector<2x32xf32>, vector<32x32xf32>, vector<2x32xf32> -> vector<2x32xf32>
    %c0_160 = arith.constant 0 : index
    %c0_161 = arith.constant 0 : index
    %369 = vector.load %arg18[%c0_160, %c0_161] : memref<1x32xf32, #tpu.memory_space<vmem>>, vector<1x32xf32>
    %370 = vector.broadcast %369 : vector<1x32xf32> to vector<2x32xf32>
    %371 = arith.addf %368, %370 : vector<2x32xf32>
    %372 = math.tanh %371 : vector<2x32xf32>
    %c0_162 = arith.constant 0 : index
    %c0_163 = arith.constant 0 : index
    %373 = vector.load %arg19[%c0_162, %c0_163] : memref<32x1xf32, #tpu.memory_space<vmem>>, vector<32x1xf32>
    %cst_164 = arith.constant dense<0.000000e+00> : vector<2x1xf32>
    %374 = tpu.matmul %372, %373, %cst_164 {dimension_numbers = #tpu.dot_dimension_numbers<[1], [0], [0], [1], [0, 0, 1, 1], [], []>} : vector<2x32xf32>, vector<32x1xf32>, vector<2x1xf32> -> vector<2x1xf32>
    %c0_165 = arith.constant 0 : index
    %c0_166 = arith.constant 0 : index
    %375 = vector.load %arg20[%c0_165, %c0_166] : memref<1x1xf32, #tpu.memory_space<vmem>>, vector<1x1xf32>
    %376 = vector.broadcast %375 : vector<1x1xf32> to vector<2x1xf32>
    %377 = arith.addf %374, %376 : vector<2x1xf32>
    %c0_167 = arith.constant 0 : index
    %c0_168 = arith.constant 0 : index
    %378 = vector.load %arg21[%c0_167, %c0_168] : memref<2x1xf32, #tpu.memory_space<vmem>>, vector<2x1xf32>
    tpu.vector_store %arg21[%c0_167, %c0_168], %377 {strides = array<i32>} : memref<2x1xf32, #tpu.memory_space<vmem>>, vector<2x1xf32>,
    return
  }
  func.func @transform_0(%arg0: i32) -> (i32, i32) {
    %c0_i32 = arith.constant 0 : i32
    %c0_i32_0 = arith.constant 0 : i32
    %c0_i32_1 = arith.constant 0 : i32
    return %c0_i32, %c0_i32_0 : i32, i32
  }
  func.func @transform_1(%arg0: i32) -> (i32, i32, i32) {
    %c0_i32 = arith.constant 0 : i32
    %c0_i32_0 = arith.constant 0 : i32
    %c0_i32_1 = arith.constant 0 : i32
    %c0_i32_2 = arith.constant 0 : i32
    return %c0_i32, %c0_i32_0, %c0_i32_1 : i32, i32, i32
  }
  func.func @transform_2(%arg0: i32) -> (i32, i32) {
    %c0_i32 = arith.constant 0 : i32
    %c0_i32_0 = arith.constant 0 : i32
    %c0_i32_1 = arith.constant 0 : i32
    return %c0_i32, %c0_i32_0 : i32, i32
  }
  func.func @transform_3(%arg0: i32) -> (i32, i32) {
    %c0_i32 = arith.constant 0 : i32
    %c0_i32_0 = arith.constant 0 : i32
    %c0_i32_1 = arith.constant 0 : i32
    return %c0_i32, %c0_i32_0 : i32, i32
  }
  func.func @transform_4(%arg0: i32) -> (i32, i32, i32) {
    %c0_i32 = arith.constant 0 : i32
    %c0_i32_0 = arith.constant 0 : i32
    %c0_i32_1 = arith.constant 0 : i32
    %c0_i32_2 = arith.constant 0 : i32
    return %c0_i32, %c0_i32_0, %c0_i32_1 : i32, i32, i32
  }
  func.func @transform_5(%arg0: i32) -> (i32, i32, i32) {
    %c0_i32 = arith.constant 0 : i32
    %c0_i32_0 = arith.constant 0 : i32
    %c0_i32_1 = arith.constant 0 : i32
    %c0_i32_2 = arith.constant 0 : i32
    return %c0_i32, %c0_i32_0, %c0_i32_1 : i32, i32, i32
  }
  func.func @transform_6(%arg0: i32) -> (i32, i32, i32) {
    %c0_i32 = arith.constant 0 : i32
    %c0_i32_0 = arith.constant 0 : i32
    %c0_i32_1 = arith.constant 0 : i32
    %c0_i32_2 = arith.constant 0 : i32
    return %c0_i32, %c0_i32_0, %c0_i32_1 : i32, i32, i32
  }
  func.func @transform_7(%arg0: i32) -> (i32, i32, i32) {
    %c0_i32 = arith.constant 0 : i32
    %c0_i32_0 = arith.constant 0 : i32
    %c0_i32_1 = arith.constant 0 : i32
    %c0_i32_2 = arith.constant 0 : i32
    return %c0_i32, %c0_i32_0, %c0_i32_1 : i32, i32, i32
  }
  func.func @transform_8(%arg0: i32) -> (i32, i32, i32) {
    %c0_i32 = arith.constant 0 : i32
    %c0_i32_0 = arith.constant 0 : i32
    %c0_i32_1 = arith.constant 0 : i32
    %c0_i32_2 = arith.constant 0 : i32
    return %c0_i32, %c0_i32_0, %c0_i32_1 : i32, i32, i32
  }
  func.func @transform_9(%arg0: i32) -> (i32, i32, i32) {
    %c0_i32 = arith.constant 0 : i32
    %c0_i32_0 = arith.constant 0 : i32
    %c0_i32_1 = arith.constant 0 : i32
    %c0_i32_2 = arith.constant 0 : i32
    return %c0_i32, %c0_i32_0, %c0_i32_1 : i32, i32, i32
  }
  func.func @transform_10(%arg0: i32) -> (i32, i32, i32) {
    %c0_i32 = arith.constant 0 : i32
    %c0_i32_0 = arith.constant 0 : i32
    %c0_i32_1 = arith.constant 0 : i32
    %c0_i32_2 = arith.constant 0 : i32
    return %c0_i32, %c0_i32_0, %c0_i32_1 : i32, i32, i32
  }
  func.func @transform_11(%arg0: i32) -> (i32, i32, i32) {
    %c0_i32 = arith.constant 0 : i32
    %c0_i32_0 = arith.constant 0 : i32
    %c0_i32_1 = arith.constant 0 : i32
    %c0_i32_2 = arith.constant 0 : i32
    return %c0_i32, %c0_i32_0, %c0_i32_1 : i32, i32, i32
  }
  func.func @transform_12(%arg0: i32) -> (i32, i32, i32) {
    %c0_i32 = arith.constant 0 : i32
    %c0_i32_0 = arith.constant 0 : i32
    %c0_i32_1 = arith.constant 0 : i32
    %c0_i32_2 = arith.constant 0 : i32
    return %c0_i32, %c0_i32_0, %c0_i32_1 : i32, i32, i32
  }
  func.func @transform_13(%arg0: i32) -> (i32, i32, i32) {
    %c0_i32 = arith.constant 0 : i32
    %c0_i32_0 = arith.constant 0 : i32
    %c0_i32_1 = arith.constant 0 : i32
    %c0_i32_2 = arith.constant 0 : i32
    return %c0_i32, %c0_i32_0, %c0_i32_1 : i32, i32, i32
  }
  func.func @transform_14(%arg0: i32) -> (i32, i32, i32) {
    %c0_i32 = arith.constant 0 : i32
    %c0_i32_0 = arith.constant 0 : i32
    %c0_i32_1 = arith.constant 0 : i32
    %c0_i32_2 = arith.constant 0 : i32
    return %c0_i32, %c0_i32_0, %c0_i32_1 : i32, i32, i32
  }
  func.func @transform_15(%arg0: i32) -> (i32, i32, i32) {
    %c0_i32 = arith.constant 0 : i32
    %c0_i32_0 = arith.constant 0 : i32
    %c0_i32_1 = arith.constant 0 : i32
    %c0_i32_2 = arith.constant 0 : i32
    return %c0_i32, %c0_i32_0, %c0_i32_1 : i32, i32, i32
  }
  func.func @transform_16(%arg0: i32) -> (i32, i32) {
    %c0_i32 = arith.constant 0 : i32
    %c0_i32_0 = arith.constant 0 : i32
    %c0_i32_1 = arith.constant 0 : i32
    return %c0_i32, %c0_i32_0 : i32, i32
  }
  func.func @transform_17(%arg0: i32) -> (i32, i32) {
    %c0_i32 = arith.constant 0 : i32
    %c0_i32_0 = arith.constant 0 : i32
    %c0_i32_1 = arith.constant 0 : i32
    return %c0_i32, %c0_i32_0 : i32, i32
  }
  func.func @transform_18(%arg0: i32) -> (i32, i32) {
    %c0_i32 = arith.constant 0 : i32
    %c0_i32_0 = arith.constant 0 : i32
    %c0_i32_1 = arith.constant 0 : i32
    return %c0_i32, %c0_i32_0 : i32, i32
  }
  func.func @transform_19(%arg0: i32) -> (i32, i32) {
    %c0_i32 = arith.constant 0 : i32
    %c0_i32_0 = arith.constant 0 : i32
    %c0_i32_1 = arith.constant 0 : i32
    return %c0_i32, %c0_i32_0 : i32, i32
  }
  func.func @transform_20(%arg0: i32) -> (i32, i32) {
    %c0_i32 = arith.constant 0 : i32
    %c0_i32_0 = arith.constant 0 : i32
    %c0_i32_1 = arith.constant 0 : i32
    return %c0_i32, %c0_i32_0 : i32, i32
  }
}

</mosaic_0001>

<bundles_post_ra>
// kernel: tpu_custom_call.1
= control target key start
LH: loop header
LB: loop body
LE: loop exit
PB: predicated region body
PF: predicated region fallthrough
CT: control target
= control target key end

     0   :  { %s5513_s0 = inlined_call_operand.hbm [shape: f32[16,32], index: 0, kind: input, shape index: {}]   ;;  %s5514_s1 = inlined_call_operand.vmem [shape: f32[2,1,8], index: 1, kind: input, shape index: {}]   ;;  %s5515_s2 = inlined_call_operand.hbm [shape: f32[1,32], index: 2, kind: input, shape index: {}]   ;;  %s5516_s3 = inlined_call_operand.hbm [shape: f32[1,32], index: 3, kind: input, shape index: {}]   ;;  %s5517_s4 = inlined_call_operand.vmem [shape: f32[2,32,96], index: 4, kind: input, shape index: {}]   ;;  %s5518_s5 = inlined_call_operand.vmem [shape: f32[2,1,96], index: 5, kind: input, shape index: {}]   ;;  %s5519_s6 = inlined_call_operand.vmem [shape: f32[2,32,32], index: 6, kind: input, shape index: {}]   ;;  %s5520_s7 = inlined_call_operand.vmem [shape: f32[2,1,32], index: 7, kind: input, shape index: {}]   ;;  %s5521_s8 = inlined_call_operand.vmem [shape: f32[2,1,32], index: 8, kind: input, shape index: {}]   ;;  %s5522_s9 = inlined_call_operand.vmem [shape: f32[2,1,32], index: 9, kind: input, shape index: {}]   ;;  %s5523_s10 = inlined_call_operand.vmem [shape: f32[2,32,64], index: 10, kind: input, shape index: {}]   ;;  %s5524_s11 = inlined_call_operand.vmem [shape: f32[2,1,64], index: 11, kind: input, shape index: {}]   ;;  %s5525_s12 = inlined_call_operand.vmem [shape: f32[2,64,32], index: 12, kind: input, shape index: {}]   ;;  %s5526_s13 = inlined_call_operand.vmem [shape: f32[2,1,32], index: 13, kind: input, shape index: {}]   ;;  %s5527_s14 = inlined_call_operand.vmem [shape: f32[2,1,32], index: 14, kind: input, shape index: {}]   ;;  %s5528_s15 = inlined_call_operand.vmem [shape: f32[2,1,32], index: 15, kind: input, shape index: {}]   ;;  %s5529_s16 = inlined_call_operand.vmem [shape: f32[32,32], index: 16, kind: input, shape index: {}]   ;;  %s5530_s17 = inlined_call_operand.vmem [shape: f32[1,32], index: 17, kind: input, shape index: {}]   ;;  %s5531_s18 = inlined_call_operand.vmem [shape: f32[32,1], index: 18, kind: input, shape index: {}]   ;;  %s5532_s19 = inlined_call_operand.<no memory space> [shape: f32[1,1], index: 19, kind: input, shape index: {}]   ;;  %s5533_s20 = inlined_call_operand.vmem [shape: f32[2,1], index: 20, kind: output, shape index: {}]  }
   0x1   :  { %5552 = sst [smem:[#allocation10_spill]] %s5513_s0  ;;  %v25_v0 = vstv %s5532_s19 }
   0x2   :  { %5553 = sst [smem:[#allocation11_spill]] %s5514_s1  ;;  %26 = vst [vmem:[#allocation2] sm:$0x1] %v25_v0 }
   0x3   :  { %5554 = sst [smem:[#allocation12_spill]] %s5515_s2 }
   0x4   :  { %5555 = sst [smem:[#allocation13_spill]] %s5516_s3 }
   0x5   :  { %5556 = sst [smem:[#allocation14_spill]] %s5517_s4 }
   0x6   :  { %27 = vsyncpa [#allocation4], 0 }
   0x7   :  { %28 = vsyncpa [#allocation6], 0  ;;  %s4751_s23 = smov [#allocation5]   ;;  %s4752_s2 = smov [#allocation3]  }
   0x8   :  { %s49_s24 = sshll.u32 %s4751_s23, 4  ;;  %s34_s25 = sshll.u32 %s4752_s2, 4  ;;  %s50_s24 = int_to_ptr.vmem [resolvable:$true] %s49_s24  ;;  %s35_s25 = int_to_ptr.vmem [resolvable:$true] %s34_s25 }
   0x9   :  { %s4695_s3 = scalar_lea.vmem %s50_s24, 16  ;;  %s4699_s26 = scalar_lea.vmem %s50_s24, 32 }
   0xa   :  { %p4696_p0 = scmp.ne.s32.totalorder %s50_s24, %s4695_s3  ;;  %p4700_p1 = scmp.lt.s32.totalorder %s50_s24, %s50_s24 }
   0xb   :  { %p4701_p2 = scmp.lt.s32.totalorder %s4699_s26, %s4695_s3 }
   0xd   :  { %p4702_p3 = por %p4701_p2, %p4700_p1 }
   0xf   :  { %p4703_p4 = pnand %p4702_p3, %p4696_p0 }
  0x11   :  { %4706 = shalt.err (!%p4703_p4)
}
  0x12   :  { %s5557_s19 = sld [smem:[#allocation12_spill]]  ;;  %s4715_s4 = scalar_lea.vmem %s35_s25, 256 }
  0x13   :  { %p4716_p5 = scmp.ne.s32.totalorder %s35_s25, %s4715_s4  ;;  %p4720_p6 = scmp.lt.s32.totalorder %s35_s25, %s35_s25 }
  0x14   :  { %p4721_p7 = scmp.lt.s32.totalorder %s4715_s4, %s4715_s4 }
  0x16   :  { %p4722_p8 = por %p4721_p7, %p4720_p6 }
  0x18   :  { %52 = dma.hbm_to_vmem [thread:$0]  %s5557_s19, 16, %s50_s24, [#allocation6]  }
  0x19   :  { %p4723_p9 = pnand %p4722_p8, %p4716_p5 }
  0x1b   :  { %4726 = shalt.err (!%p4723_p9)
}
  0x1c   :  { %s4753_s29 = smov 128   ;;  %s5536_s30 = smov 8  }
  0x1d   :  { %s5558_s1 = sld [smem:[#allocation10_spill]]  ;;  %s4755_s22 = smov [#allocation7]  }
  0x1e   :  { %s59_s23 = sshll.u32 %s4755_s22, 4  ;;  %s60_s23 = int_to_ptr.vmem [resolvable:$true] %s59_s23 }
  0x1f   :  { %s4735_s2 = scalar_lea.vmem %s60_s23, 16  ;;  %s4739_s24 = scalar_lea.vmem %s60_s23, 32 }
  0x20   :  { %p4736_p10 = scmp.ne.s32.totalorder %s60_s23, %s4735_s2  ;;  %p4740_p11 = scmp.lt.s32.totalorder %s60_s23, %s60_s23 }
  0x21   :  { %p4741_p12 = scmp.lt.s32.totalorder %s4739_s24, %s4735_s2 }
  0x23   :  { %40 = dma.hbm_to_vmem [thread:$0]  %s5558_s1, 256, %s35_s25, [#allocation4], %s4753_s29, %s4753_s29, %s5536_s30  }
  0x24   :  { %p4742_p13 = por %p4741_p12, %p4740_p11 }
  0x26   :  { %p4743_p0 = pnand %p4742_p13, %p4736_p10 }
  0x28   :  { %4746 = shalt.err (!%p4743_p0)
}
  0x29   :  { %s5559_s27 = sld [smem:[#allocation13_spill]] }
  0x2f   :  { %62 = dma.hbm_to_vmem [thread:$0]  %s5559_s27, 16, %s60_s23, [#allocation6]  }
  0x30   :  { %4747 = dma.done.wait [#allocation4], 256  }
  0x31   :  { %4748 = vsyncadd [#allocation4], 4294967040 }
  0x32   :  { %4749 = dma.done.wait [#allocation6], 32  }
  0x33   :  { %4750 = vsyncadd [#allocation6], 4294967264  ;;  %vm108_vm0 = vcmask 261120   ;;  %v104_v1 = vld [vmem:[#allocation3] sm:$0xff]  ;;  %v105_v2 = vld [vmem:[#allocation3 + $0x8] sm:$0xff]  ;;  %s5560_s19 = sld [smem:[#allocation14_spill]] }
  0x34   :  { %v109_v3 = vsel %vm108_vm0, %v104_v1, 0.0  ;;  %v112_v4 = vsel %vm108_vm0, %v105_v2, 0.0  ;;  %v4039_v26 = vld [vmem:[#allocation5] ss:$0 sm:$0xff]  ;;  %v4040_v28 = vld [vmem:[#allocation7] ss:$0 sm:$0xff] }
  0x35   :  { %110 = vadd.xlane.f32.xlu0 %v109_v3  ;;  %v4756_v35 = vmov 0.0   ;;  %vm4757_vm1 = vmmov 0   ;;  %v4041_v36 = vld [vmem:[%s5518_s5] ss:$0 sm:$0xff]  ;;  %s4758_s24 = smov 96   ;;  %vm249_vm2 = vcmask 64512  }
  0x36   :  { %4296 = vmatprep.subr.mxu1 %v4756_v35  ;;  %4298 = vmatprep.mubr.msk.f32.mxu1 %vm4757_vm1, %v4756_v35  ;;  %s5561_s27 = sld [smem:[#allocation11_spill]]  ;;  %s4759_s4 = smov 64   ;;  %vm1622_vm3 = vcmask 195584   ;;  %vm1619_vm4 = vcmask 130048   ;;  %vm1880_vm5 = vcmask 523264   ;;  %vm3872_vm6 = vcmask 1041409  }
  0x37   :  { %s4760_s29 = smov 88   ;;  %s4761_s0 = smov 120   ;;  %vm4031_vm7 = vcmask 1024  }
  0x38   :  { %s4762_s21 = smov 56   ;;  %s4763_s1 = smov 80  }
  0x39   :  { %113 = vadd.xlane.f32.xlu0 %v112_v4  ;;  %v157_v15 = vld [vmem:[%s5560_s19 + $0x18] sm:$0xff]  ;;  %v156_v16 = vld [vmem:[%s5560_s19 + $0x10] sm:$0xff]  ;;  %v155_v17 = vld [vmem:[%s5560_s19 + $0x8] sm:$0xff]  ;;  %s5548_s22 = smov 112   ;;  %s5546_s23 = smov 48  }
  0x3a   :  { %4285 = vmatprep.subr.mxu0 %v157_v15  ;;  %v154_v18 = vld [vmem:[%s5560_s19] sm:$0xff]  ;;  %s5544_s2 = smov 72   ;;  %s5542_s3 = smov 104  }
  0x3b   :  { %4286 = vmatpush3.msra.mxu0 %v157_v15  ;;  %s5538_s26 = smov 40   ;;  %s5540_s25 = smov 16  }
  0x3c   :  { %4287 = vmatprep.subr.mxu0 %v156_v16  ;;  %v4945_v44 = vld [vmem:[%s5561_s27] ss:$0 sm:$0xff]  ;;  %v4951_v49 = vld [vmem:[%s5561_s27 + $0x1] ss:$0 sm:$0xff]  ;;  %s5566_s28 = smov 40  }
  0x3d   :  { %4288 = vmatpush3.msra.mxu0 %v156_v16 }
  0x3e   :  { %4289 = vmatprep.subr.mxu0 %v155_v17 }
  0x3f   :  { %4290 = vmatpush3.msra.mxu0 %v155_v17 }
  0x40   :  { %4291 = vmatprep.subr.mxu0 %v154_v18 }
  0x41   :  { %4292 = vmatpush3.msra.mxu0 %v154_v18 }
  0x42   :  { %4306 = vmatprep.subr.mxu0 %v4756_v35 }
  0xbe   :  { %v111_v5 = vpop.xlane.xlu0 %110 }
  0xbf   :  { %v116_v6 = vmul.f32 0.03125, %v111_v5 }
  0xc1   :  { %v118_v7 = vsub.f32 %v104_v1, %v116_v6 }
  0xc2   :  { %v114_v8 = vpop.xlane.xlu0 %113 }
  0xc3   :  { %v117_v9 = vmul.f32 0.03125, %v114_v8  ;;  %v120_v10 = vmul.f32 %v118_v7, %v118_v7 }
  0xc5   :  { %v119_v11 = vsub.f32 %v105_v2, %v117_v9  ;;  %v122_v12 = vsel %vm108_vm0, %v120_v10, 0.0 }
  0xc6   :  { %123 = vadd.xlane.f32.xlu1 %v122_v12 }
  0xc7   :  { %v121_v13 = vmul.f32 %v119_v11, %v119_v11 }
  0xc9   :  { %v125_v14 = vsel %vm108_vm0, %v121_v13, 0.0 }
  0xca   :  { %126 = vadd.xlane.f32.xlu1 %v125_v14 }
 0x14f   :  { %v124_v19 = vpop.xlane.xlu1 %123 }
 0x150   :  { %v128_v20 = vmul.f32 0.03125, %v124_v19 }
 0x152   :  { %v130_v21 = vadd.f32 1e-12, %v128_v20 }
 0x153   :  { %v127_v22 = vpop.xlane.xlu1 %126 }
 0x154   :  { %4591 = vrsqrt.f32 %v130_v21  ;;  %v129_v23 = vmul.f32 0.03125, %v127_v22 }
 0x156   :  { %v131_v24 = vadd.f32 1e-12, %v129_v23 }
 0x158   :  { %4593 = vrsqrt.f32 %v131_v24 }
 0x161   :  { %v4592_v25 = vpop.eup %4591 }
 0x162   :  { %v134_v27 = vmul.f32 %v4592_v25, %v118_v7 }
 0x164   :  { %v142_v29 = vmul.f32 %v4039_v26, %v134_v27 }
 0x165   :  { %v4594_v30 = vpop.eup %4593 }
 0x166   :  { %v135_v31 = vmul.f32 %v4594_v30, %v119_v11  ;;  %v4905_v32 = vadd.f32 %v4040_v28, %v142_v29 }
 0x168   :  { %v143_v33 = vmul.f32 %v4039_v26, %v135_v31  ;;  %4293 = vmatprep.mubr.msk.f32.mxu0 %vm108_vm0, %v4905_v32 }
 0x16a   :  { %v4909_v34 = vadd.f32 %v4040_v28, %v143_v33 }
 0x16c   :  { %4294 = vmatmul.mubr.msk.f32.vlgmr.msra.gmra.mxu0 %vm108_vm0, %v4909_v34 }
 0x16d   :  { %4308 = vmatprep.mubr.msk.f32.mxu0 %vm4757_vm1, %v4756_v35 }
 0x22c   :  { %v4295_v37 = vpop.f32.mrf.mxu0 }
 0x22d   :  { %v4922_v38 = vadd.f32 %v4295_v37, %v4041_v36 }
 0x22e   :  { %v237_v39 = vpop.f32.mrf.mxu0 }
 0x22f   :  { %v4924_v40 = vadd.f32 %v4041_v36, %v237_v39  ;;  %325 = vrot.lane.b32.xlu1 %v4922_v38, %s4758_s24 }
 0x231   :  { %247 = vrot.lane.b32.xlu0 %v4924_v40, %s4758_s24 }
 0x2a1   :  { %v326_v42 = vpop.permute.xlu1 %325 }
 0x2a3   :  { %v248_v41 = vpop.permute.xlu0 %247 }
 0x2a4   :  { %4297 = vmatpush3.xpose.msk.msra.mxu1 %vm249_vm2, %v248_v41 }
 0x2a5   :  { %4301 = vmatprep.subr.mxu1 %v4756_v35 }
 0x2a7   :  { %4299 = vmatmul.mubr.msk.f32.vlgmr.msra.gmra.mxu1 %vm249_vm2, %v4924_v40 }
 0x2a8   :  { %4302 = vmatpush3.xpose.msk.msra.mxu1 %vm249_vm2, %v326_v42  ;;  %4303 = vmatprep.mubr.msk.f32.mxu1 %vm4757_vm1, %v4756_v35 }
 0x2a9   :  { %4311 = vmatprep.subr.mxu1 %v4756_v35 }
 0x2ab   :  { %4304 = vmatmul.mubr.msk.f32.vlgmr.msra.gmra.mxu1 %vm249_vm2, %v4922_v38 }
 0x2ac   :  { %4313 = vmatprep.mubr.msk.f32.mxu1 %vm4757_vm1, %v4756_v35 }
 0x367   :  { %v320_v43 = vpop.f32.mrf.mxu1 }
 0x368   :  { %v401_v45 = vmul.f32 0.35355338, %v320_v43 }
 0x369   :  { %v4300_v46 = vpop.f32.mrf.mxu1 }
 0x36a   :  { %v415_v47 = vadd.f32 %v4945_v44, %v401_v45 }
 0x36b   :  { %v397_v48 = vpop.f32.mrf.mxu1 }
 0x36c   :  { %v402_v50 = vmul.f32 0.35355338, %v397_v48  ;;  %v417_v51 = vsel %vm249_vm2, %v415_v47, -inf }
 0x36d   :  { %418 = vmax.xlane.f32.xlu1 %v417_v51  ;;  %v4305_v52 = vpop.f32.mrf.mxu1 }
 0x36e   :  { %v416_v53 = vadd.f32 %v4951_v49, %v402_v50 }
 0x370   :  { %v420_v54 = vsel %vm249_vm2, %v416_v53, -inf }
 0x371   :  { %421 = vmax.xlane.f32.xlu0 %v420_v54 }
 0x37e   :  { %515 = vrot.lane.b32.xlu1 %v4922_v38, %s4759_s4 }
 0x382   :  { %593 = vrot.lane.b32.xlu1 %v4924_v40, %s4760_s29 }
 0x386   :  { %671 = vrot.lane.b32.xlu1 %v4922_v38, %s4760_s29 }
 0x3f6   :  { %v419_v55 = vpop.xlane.xlu1 %418 }
 0x3f7   :  { %v423_v56 = vsub.f32 %v415_v47, %v419_v55 }
 0x3f9   :  { %v425_v57 = vmul.f32 1.442695, %v423_v56 }
 0x3fa   :  { %v516_v58 = vpop.permute.xlu1 %515  ;;  %v422_v59 = vpop.xlane.xlu0 %421 }
 0x3fb   :  { %4595 = vpow2.f32 %v425_v57  ;;  %v424_v60 = vsub.f32 %v416_v53, %v422_v59  ;;  %4312 = vmatpush3.msra.mxu1 %v516_v58 }
 0x3fc   :  { %4321 = vmatprep.subr.mxu1 %v4756_v35 }
 0x3fd   :  { %v427_v61 = vmul.f32 1.442695, %v424_v60 }
 0x3fe   :  { %v594_v2 = vpop.permute.xlu1 %593 }
 0x3ff   :  { %4597 = vpow2.f32 %v427_v61 }
 0x402   :  { %v672_v3 = vpop.permute.xlu1 %671 }
 0x408   :  { %v4596_v62 = vpop.eup %4595 }
 0x409   :  { %v429_v63 = vsel %vm249_vm2, %v4596_v62, 0.0 }
 0x40a   :  { %430 = vadd.xlane.f32.xlu0 %v429_v63 }
 0x40c   :  { %v4598_v0 = vpop.eup %4597 }
 0x40d   :  { %v432_v1 = vsel %vm249_vm2, %v4598_v0, 0.0 }
 0x40e   :  { %433 = vadd.xlane.f32.xlu1 %v432_v1 }
 0x41f   :  { %669 = vrot.lane.b32.xlu1 %v4922_v38, %s4761_s0 }
 0x420   :  { %439 = vrot.lane.b32.xlu0 %v4924_v40, %s4759_s4 }
 0x424   :  { %591 = vrot.lane.b32.xlu0 %v4924_v40, %s4761_s0 }
 0x493   :  { %v431_v4 = vpop.xlane.xlu0 %430 }
 0x494   :  { %4599 = vrcp.f32 %v431_v4 }
 0x497   :  { %v434_v5 = vpop.xlane.xlu1 %433  ;;  %v440_v6 = vpop.permute.xlu0 %439 }
 0x498   :  { %4601 = vrcp.f32 %v434_v5  ;;  %4307 = vmatpush3.msra.mxu0 %v440_v6 }
 0x499   :  { %4316 = vmatprep.subr.mxu0 %v4756_v35 }
 0x49b   :  { %v592_v11 = vpop.permute.xlu0 %591  ;;  %v670_v12 = vpop.permute.xlu1 %669 }
 0x4a1   :  { %v4600_v7 = vpop.eup %4599 }
 0x4a2   :  { %v437_v8 = vmul.f32 %v4600_v7, %v4596_v62 }
 0x4a4   :  { %4309 = vmatmul.mubr.msk.f32.vlgmr.msra.gmra.mxu0 %vm249_vm2, %v437_v8 }
 0x4a5   :  { %v4602_v9 = vpop.eup %4601  ;;  %4317 = vmatpush3.xpose.msk.msra.mxu0 %vm249_vm2, %v594_v2  ;;  %4318 = vmatprep.mubr.msk.f32.mxu0 %vm4757_vm1, %v4756_v35 }
 0x4a6   :  { %v438_v10 = vmul.f32 %v4602_v9, %v4598_v0  ;;  %4326 = vmatprep.subr.mxu0 %v4756_v35 }
 0x4a8   :  { %4314 = vmatmul.mubr.msk.f32.vlgmr.msra.gmra.mxu1 %vm249_vm2, %v438_v10  ;;  %4319 = vmatmul.mubr.msk.f32.vlgmr.msra.gmra.mxu0 %vm249_vm2, %v592_v11 }
 0x4a9   :  { %4322 = vmatpush3.xpose.msk.msra.mxu1 %vm249_vm2, %v672_v3  ;;  %4323 = vmatprep.mubr.msk.f32.mxu1 %vm4757_vm1, %v4756_v35 }
 0x4aa   :  { %4331 = vmatprep.subr.mxu1 %v4756_v35  ;;  %4328 = vmatprep.mubr.msk.f32.mxu0 %vm4757_vm1, %v4756_v35 }
 0x4ac   :  { %4324 = vmatmul.mubr.msk.f32.vlgmr.msra.gmra.mxu1 %vm249_vm2, %v670_v12 }
 0x4ad   :  { %4333 = vmatprep.mubr.msk.f32.mxu1 %vm4757_vm1, %v4756_v35 }
 0x564   :  { %v4988_v13 = vpop.f32.mrf.mxu0 }
 0x566   :  { %v4310_v14 = vpop.f32.mrf.mxu0 }
 0x568   :  { %v4990_v15 = vpop.f32.mrf.mxu1  ;;  %v665_v16 = vpop.f32.mrf.mxu0 }
 0x569   :  { %v747_v17 = vmul.f32 0.35355338, %v665_v16 }
 0x56a   :  { %v4315_v18 = vpop.f32.mrf.mxu1  ;;  %v4320_v19 = vpop.f32.mrf.mxu0 }
 0x56b   :  { %v749_v20 = vadd.f32 %v4945_v44, %v747_v17 }
 0x56c   :  { %v743_v21 = vpop.f32.mrf.mxu1 }
 0x56d   :  { %v748_v22 = vmul.f32 0.35355338, %v743_v21  ;;  %v751_v23 = vsel %vm249_vm2, %v749_v20, -inf }
 0x56e   :  { %752 = vmax.xlane.f32.xlu0 %v751_v23  ;;  %v4325_v24 = vpop.f32.mrf.mxu1 }
 0x56f   :  { %v750_v25 = vadd.f32 %v4951_v49, %v748_v22 }
 0x571   :  { %v754_v26 = vsel %vm249_vm2, %v750_v25, -inf }
 0x572   :  { %755 = vmax.xlane.f32.xlu1 %v754_v26 }
 0x583   :  { %849 = vrot.lane.b32.xlu1 %v4922_v38, %s4762_s21 }
 0x584   :  { %773 = vrot.lane.b32.xlu0 %v4924_v40, %s4762_s21 }
 0x587   :  { %927 = vrot.lane.b32.xlu1 %v4924_v40, %s4763_s1 }
 0x58b   :  { %1005 = vrot.lane.b32.xlu1 %v4922_v38, %s4763_s1 }
 0x58f   :  { %1003 = vrot.lane.b32.xlu1 %v4922_v38, %s5548_s22 }
 0x5f7   :  { %v753_v27 = vpop.xlane.xlu0 %752 }
 0x5f8   :  { %v757_v28 = vsub.f32 %v749_v20, %v753_v27 }
 0x5fa   :  { %v759_v29 = vmul.f32 1.442695, %v757_v28 }
 0x5fb   :  { %v774_v30 = vpop.permute.xlu0 %773  ;;  %v756_v31 = vpop.xlane.xlu1 %755 }
 0x5fc   :  { %4603 = vpow2.f32 %v759_v29  ;;  %v758_v33 = vsub.f32 %v750_v25, %v756_v31  ;;  %4327 = vmatpush3.msra.mxu0 %v774_v30 }
 0x5fd   :  { %4336 = vmatprep.subr.mxu0 %v4756_v35 }
 0x5fe   :  { %v761_v36 = vmul.f32 1.442695, %v758_v33 }
 0x5ff   :  { %v850_v37 = vpop.permute.xlu1 %849 }
 0x600   :  { %4605 = vpow2.f32 %v761_v36  ;;  %4332 = vmatpush3.msra.mxu1 %v850_v37 }
 0x601   :  { %4341 = vmatprep.subr.mxu1 %v4756_v35 }
 0x603   :  { %v928_v47 = vpop.permute.xlu1 %927 }
 0x607   :  { %v1006_v52 = vpop.permute.xlu1 %1005 }
 0x609   :  { %v4604_v39 = vpop.eup %4603 }
 0x60a   :  { %v763_v41 = vsel %vm249_vm2, %v4604_v39, 0.0 }
 0x60b   :  { %764 = vadd.xlane.f32.xlu0 %v763_v41  ;;  %v1004_v55 = vpop.permute.xlu1 %1003 }
 0x60d   :  { %v4606_v42 = vpop.eup %4605 }
 0x60e   :  { %v766_v43 = vsel %vm249_vm2, %v4606_v42, 0.0 }
 0x60f   :  { %767 = vadd.xlane.f32.xlu0 %v766_v43 }
 0x625   :  { %925 = vrot.lane.b32.xlu0 %v4924_v40, %s5548_s22  ;;  %s5567_s22 = smov 8  }
 0x694   :  { %v765_v45 = vpop.xlane.xlu0 %764 }
 0x695   :  { %4607 = vrcp.f32 %v765_v45 }
 0x698   :  { %v768_v46 = vpop.xlane.xlu0 %767 }
 0x699   :  { %4609 = vrcp.f32 %v768_v46 }
 0x69c   :  { %v926_v54 = vpop.permute.xlu0 %925 }
 0x6a2   :  { %v4608_v48 = vpop.eup %4607 }
 0x6a3   :  { %v771_v50 = vmul.f32 %v4608_v48, %v4604_v39 }
 0x6a5   :  { %4329 = vmatmul.mubr.msk.f32.vlgmr.msra.gmra.mxu0 %vm249_vm2, %v771_v50 }
 0x6a6   :  { %v4610_v51 = vpop.eup %4609  ;;  %4337 = vmatpush3.xpose.msk.msra.mxu0 %vm249_vm2, %v928_v47  ;;  %4338 = vmatprep.mubr.msk.f32.mxu0 %vm4757_vm1, %v4756_v35 }
 0x6a7   :  { %v772_v53 = vmul.f32 %v4610_v51, %v4606_v42  ;;  %4346 = vmatprep.subr.mxu0 %v4756_v35 }
 0x6a9   :  { %4334 = vmatmul.mubr.msk.f32.vlgmr.msra.gmra.mxu1 %vm249_vm2, %v772_v53  ;;  %4339 = vmatmul.mubr.msk.f32.vlgmr.msra.gmra.mxu0 %vm249_vm2, %v926_v54 }
 0x6aa   :  { %4342 = vmatpush3.xpose.msk.msra.mxu1 %vm249_vm2, %v1006_v52  ;;  %4343 = vmatprep.mubr.msk.f32.mxu1 %vm4757_vm1, %v4756_v35 }
 0x6ab   :  { %4351 = vmatprep.subr.mxu1 %v4756_v35  ;;  %4348 = vmatprep.mubr.msk.f32.mxu0 %vm4757_vm1, %v4756_v35 }
 0x6ad   :  { %4344 = vmatmul.mubr.msk.f32.vlgmr.msra.gmra.mxu1 %vm249_vm2, %v1004_v55 }
 0x6ae   :  { %4353 = vmatprep.mubr.msk.f32.mxu1 %vm4757_vm1, %v4756_v35 }
 0x765   :  { %v5028_v56 = vpop.f32.mrf.mxu0 }
 0x767   :  { %v4330_v57 = vpop.f32.mrf.mxu0 }
 0x769   :  { %v5030_v58 = vpop.f32.mrf.mxu1  ;;  %v999_v59 = vpop.f32.mrf.mxu0 }
 0x76a   :  { %v1081_v60 = vmul.f32 0.35355338, %v999_v59 }
 0x76b   :  { %v4335_v61 = vpop.f32.mrf.mxu1  ;;  %v4340_v62 = vpop.f32.mrf.mxu0 }
 0x76c   :  { %v1083_v63 = vadd.f32 %v4945_v44, %v1081_v60 }
 0x76d   :  { %v1077_v0 = vpop.f32.mrf.mxu1 }
 0x76e   :  { %v1082_v1 = vmul.f32 0.35355338, %v1077_v0  ;;  %v1085_v2 = vsel %vm249_vm2, %v1083_v63, -inf }
 0x76f   :  { %1086 = vmax.xlane.f32.xlu0 %v1085_v2  ;;  %v4345_v3 = vpop.f32.mrf.mxu1 }
 0x770   :  { %v1084_v4 = vadd.f32 %v4951_v49, %v1082_v1 }
 0x772   :  { %v1088_v5 = vsel %vm249_vm2, %v1084_v4, -inf }
 0x773   :  { %1089 = vmax.xlane.f32.xlu1 %v1088_v5  ;;  %v1626_v5 = vld [vmem:[%s5519_s6 + $0x8] sm:$0xff] }
 0x784   :  { %1183 = vrot.lane.b32.xlu1 %v4922_v38, %s5546_s23 }
 0x785   :  { %1107 = vrot.lane.b32.xlu0 %v4924_v40, %s5546_s23  ;;  %s5568_s23 = smov 16  }
 0x788   :  { %1261 = vrot.lane.b32.xlu1 %v4924_v40, %s5544_s2 }
 0x78c   :  { %1339 = vrot.lane.b32.xlu1 %v4922_v38, %s5544_s2 }
 0x790   :  { %1337 = vrot.lane.b32.xlu1 %v4922_v38, %s5542_s3 }
 0x7f8   :  { %v1087_v6 = vpop.xlane.xlu0 %1086 }
 0x7f9   :  { %v1091_v7 = vsub.f32 %v1083_v63, %v1087_v6  ;;  %v1625_v6 = vld [vmem:[%s5519_s6] sm:$0xff] }
 0x7fb   :  { %v1093_v8 = vmul.f32 1.442695, %v1091_v7 }
 0x7fc   :  { %v1108_v9 = vpop.permute.xlu0 %1107  ;;  %v1090_v10 = vpop.xlane.xlu1 %1089 }
 0x7fd   :  { %4611 = vpow2.f32 %v1093_v8  ;;  %v1092_v11 = vsub.f32 %v1084_v4, %v1090_v10  ;;  %4347 = vmatpush3.msra.mxu0 %v1108_v9  ;;  %v1627_v4 = vld [vmem:[%s5519_s6 + $0x10] sm:$0xff] }
 0x7fe   :  { %4356 = vmatprep.subr.mxu0 %v4756_v35 }
 0x7ff   :  { %v1095_v12 = vmul.f32 1.442695, %v1092_v11 }
 0x800   :  { %v1184_v14 = vpop.permute.xlu1 %1183 }
 0x801   :  { %4613 = vpow2.f32 %v1095_v12  ;;  %4352 = vmatpush3.msra.mxu1 %v1184_v14 }
 0x802   :  { %4361 = vmatprep.subr.mxu1 %v4756_v35 }
 0x804   :  { %v1262_v22 = vpop.permute.xlu1 %1261 }
 0x808   :  { %v1340_v26 = vpop.permute.xlu1 %1339 }
 0x80a   :  { %v4612_v16 = vpop.eup %4611 }
 0x80b   :  { %v1097_v17 = vsel %vm249_vm2, %v4612_v16, 0.0 }
 0x80c   :  { %1098 = vadd.xlane.f32.xlu0 %v1097_v17  ;;  %v1338_v29 = vpop.permute.xlu1 %1337 }
 0x80e   :  { %v4614_v18 = vpop.eup %4613 }
 0x80f   :  { %v1100_v19 = vsel %vm249_vm2, %v4614_v18, 0.0 }
 0x810   :  { %1101 = vadd.xlane.f32.xlu0 %v1100_v19 }
 0x826   :  { %1259 = vrot.lane.b32.xlu0 %v4924_v40, %s5542_s3 }
 0x895   :  { %v1099_v20 = vpop.xlane.xlu0 %1098 }
 0x896   :  { %4615 = vrcp.f32 %v1099_v20 }
 0x899   :  { %v1102_v21 = vpop.xlane.xlu0 %1101 }
 0x89a   :  { %4617 = vrcp.f32 %v1102_v21 }
 0x89d   :  { %v1260_v28 = vpop.permute.xlu0 %1259 }
 0x8a3   :  { %v4616_v23 = vpop.eup %4615 }
 0x8a4   :  { %v1105_v24 = vmul.f32 %v4616_v23, %v4612_v16 }
 0x8a6   :  { %4349 = vmatmul.mubr.msk.f32.vlgmr.msra.gmra.mxu0 %vm249_vm2, %v1105_v24 }
 0x8a7   :  { %v4618_v25 = vpop.eup %4617  ;;  %4357 = vmatpush3.xpose.msk.msra.mxu0 %vm249_vm2, %v1262_v22  ;;  %4358 = vmatprep.mubr.msk.f32.mxu0 %vm4757_vm1, %v4756_v35 }
 0x8a8   :  { %v1106_v27 = vmul.f32 %v4618_v25, %v4614_v18  ;;  %4366 = vmatprep.subr.mxu0 %v4756_v35 }
 0x8aa   :  { %4354 = vmatmul.mubr.msk.f32.vlgmr.msra.gmra.mxu1 %vm249_vm2, %v1106_v27  ;;  %4359 = vmatmul.mubr.msk.f32.vlgmr.msra.gmra.mxu0 %vm249_vm2, %v1260_v28 }
 0x8ab   :  { %4362 = vmatpush3.xpose.msk.msra.mxu1 %vm249_vm2, %v1340_v26  ;;  %4363 = vmatprep.mubr.msk.f32.mxu1 %vm4757_vm1, %v4756_v35 }
 0x8ac   :  { %4371 = vmatprep.subr.mxu1 %v4756_v35  ;;  %4368 = vmatprep.mubr.msk.f32.mxu0 %vm4757_vm1, %v4756_v35 }
 0x8ae   :  { %4364 = vmatmul.mubr.msk.f32.vlgmr.msra.gmra.mxu1 %vm249_vm2, %v1338_v29 }
 0x8af   :  { %4373 = vmatprep.mubr.msk.f32.mxu1 %vm4757_vm1, %v4756_v35 }
 0x966   :  { %v1179_v30 = vpop.f32.mrf.mxu0 }
 0x968   :  { %v4350_v31 = vpop.f32.mrf.mxu0 }
 0x96a   :  { %v1255_v33 = vpop.f32.mrf.mxu1  ;;  %v1333_v36 = vpop.f32.mrf.mxu0 }
 0x96b   :  { %v1415_v37 = vmul.f32 0.35355338, %v1333_v36 }
 0x96c   :  { %v4355_v39 = vpop.f32.mrf.mxu1  ;;  %v4360_v41 = vpop.f32.mrf.mxu0 }
 0x96d   :  { %v1417_v42 = vadd.f32 %v4945_v44, %v1415_v37 }
 0x96e   :  { %v1411_v43 = vpop.f32.mrf.mxu1 }
 0x96f   :  { %v1416_v45 = vmul.f32 0.35355338, %v1411_v43  ;;  %v1419_v46 = vsel %vm249_vm2, %v1417_v42, -inf }
 0x970   :  { %1420 = vmax.xlane.f32.xlu0 %v1419_v46  ;;  %v4365_v47 = vpop.f32.mrf.mxu1 }
 0x971   :  { %v1418_v48 = vadd.f32 %v4951_v49, %v1416_v45  ;;  %v1765_v47 = vld [vmem:[%s5523_s10 + $0x10] sm:$0xff] }
 0x973   :  { %v1422_v50 = vsel %vm249_vm2, %v1418_v48, -inf }
 0x974   :  { %1423 = vmax.xlane.f32.xlu1 %v1422_v50  ;;  %v1763_v50 = vld [vmem:[%s5523_s10] sm:$0xff] }
 0x985   :  { %1517 = vrot.lane.b32.xlu1 %v4922_v38, %s5538_s26 }
 0x989   :  { %1595 = vrot.lane.b32.xlu1 %v5028_v56, %s5536_s30 }
 0x98d   :  { %1597 = vrot.lane.b32.xlu1 %v5030_v58, %s5536_s30  ;;  %s5550_s30 = smov 24  }
 0x991   :  { %1605 = vrot.lane.b32.xlu1 %v1255_v33, %s5540_s25 }
 0x9f9   :  { %v1421_v51 = vpop.xlane.xlu0 %1420 }
 0x9fa   :  { %v1425_v52 = vsub.f32 %v1417_v42, %v1421_v51 }
 0x9fc   :  { %v1427_v53 = vmul.f32 1.442695, %v1425_v52 }
 0x9fd   :  { %v1424_v54 = vpop.xlane.xlu1 %1423 }
 0x9fe   :  { %4619 = vpow2.f32 %v1427_v53  ;;  %v1426_v55 = vsub.f32 %v1418_v48, %v1424_v54  ;;  %v1764_v48 = vld [vmem:[%s5523_s10 + $0x8] sm:$0xff] }
 0xa00   :  { %v1429_v57 = vmul.f32 1.442695, %v1426_v55 }
 0xa01   :  { %v1518_v59 = vpop.permute.xlu1 %1517 }
 0xa02   :  { %4621 = vpow2.f32 %v1429_v57  ;;  %4372 = vmatpush3.msra.mxu1 %v1518_v59 }
 0xa05   :  { %v1596_v11 = vpop.permute.xlu1 %1595 }
 0xa06   :  { %v1617_v16 = vsel %vm249_vm2, %v4988_v13, %v1596_v11  ;;  %v4070_v13 = vld [vmem:[%s5520_s7] ss:$0 sm:$0xff] }
 0xa09   :  { %v1598_v12 = vpop.permute.xlu1 %1597 }
 0xa0a   :  { %v1618_v21 = vsel %vm249_vm2, %v4990_v15, %v1598_v12 }
 0xa0b   :  { %v4620_v38 = vpop.eup %4619 }
 0xa0c   :  { %v1431_v60 = vsel %vm249_vm2, %v4620_v38, 0.0 }
 0xa0d   :  { %1432 = vadd.xlane.f32.xlu0 %v1431_v60  ;;  %v1606_v17 = vpop.permute.xlu1 %1605 }
 0xa0e   :  { %v1621_v22 = vsel %vm1619_vm4, %v1618_v21, %v1606_v17 }
 0xa0f   :  { %v4622_v56 = vpop.eup %4621 }
 0xa10   :  { %v1434_v58 = vsel %vm249_vm2, %v4622_v56, 0.0 }
 0xa11   :  { %1435 = vadd.xlane.f32.xlu0 %v1434_v58 }
 0xa27   :  { %1441 = vrot.lane.b32.xlu0 %v4924_v40, %s5538_s26  ;;  %v1628_v40 = vld [vmem:[%s5519_s6 + $0x18] sm:$0xff] }
 0xa2b   :  { %1603 = vrot.lane.b32.xlu0 %v1179_v30, %s5540_s25 }
 0xa96   :  { %v1433_v61 = vpop.xlane.xlu0 %1432 }
 0xa97   :  { %4623 = vrcp.f32 %v1433_v61 }
 0xa9a   :  { %v1436_v62 = vpop.xlane.xlu0 %1435 }
 0xa9b   :  { %4625 = vrcp.f32 %v1436_v62 }
 0xa9e   :  { %v1442_v63 = vpop.permute.xlu0 %1441 }
 0xa9f   :  { %4367 = vmatpush3.msra.mxu0 %v1442_v63 }
 0xaa0   :  { %4376 = vmatprep.subr.mxu0 %v1628_v40 }
 0xaa2   :  { %v1604_v14 = vpop.permute.xlu0 %1603 }
 0xaa3   :  { %v1620_v18 = vsel %vm1619_vm4, %v1617_v16, %v1604_v14 }
 0xaa4   :  { %v4624_v0 = vpop.eup %4623 }
 0xaa5   :  { %v1439_v1 = vmul.f32 %v4624_v0, %v4620_v38  ;;  %v4073_v38 = vld [vmem:[%s5521_s8] ss:$0 sm:$0xff] }
 0xaa7   :  { %4369 = vmatmul.mubr.msk.f32.vlgmr.msra.gmra.mxu0 %vm249_vm2, %v1439_v1 }
 0xaa8   :  { %v4626_v2 = vpop.eup %4625  ;;  %4377 = vmatpush3.msra.mxu0 %v1628_v40  ;;  %v1870_v40 = vld [vmem:[%s5525_s12 + $0x28] sm:$0xff] }
 0xaa9   :  { %v1440_v3 = vmul.f32 %v4626_v2, %v4622_v56  ;;  %4378 = vmatprep.subr.mxu0 %v1627_v4  ;;  %v4074_v56 = vld [vmem:[%s5522_s9] ss:$0 sm:$0xff]  ;;  %v1872_v2 = vld [vmem:[%s5525_s12 + $0x38] sm:$0xff] }
 0xaaa   :  { %4379 = vmatpush3.msra.mxu0 %v1627_v4  ;;  %v1869_v4 = vld [vmem:[%s5525_s12 + $0x20] sm:$0xff] }
 0xaab   :  { %4374 = vmatmul.mubr.msk.f32.vlgmr.msra.gmra.mxu1 %vm249_vm2, %v1440_v3  ;;  %4380 = vmatprep.subr.mxu0 %v1626_v5  ;;  %v1871_v3 = vld [vmem:[%s5525_s12 + $0x30] sm:$0xff] }
 0xaac   :  { %4381 = vmatpush3.msra.mxu0 %v1626_v5  ;;  %v1868_v5 = vld [vmem:[%s5525_s12 + $0x18] sm:$0xff] }
 0xaad   :  { %4382 = vmatprep.subr.mxu0 %v1625_v6 }
 0xaae   :  { %4383 = vmatpush3.msra.mxu0 %v1625_v6  ;;  %v1867_v6 = vld [vmem:[%s5525_s12 + $0x10] sm:$0xff] }
 0xaaf   :  { %4398 = vmatprep.subr.mxu0 %v1872_v2 }
 0xb67   :  { %v1513_v7 = vpop.f32.mrf.mxu0 }
 0xb68   :  { %1611 = vrot.lane.b32.xlu0 %v1513_v7, %s5550_s30  ;;  %v1866_v7 = vld [vmem:[%s5525_s12 + $0x8] sm:$0xff] }
 0xb69   :  { %v4370_v8 = vpop.f32.mrf.mxu0 }
 0xb6a   :  { %v1865_v8 = vld [vmem:[%s5525_s12] sm:$0xff] }
 0xb6b   :  { %v1589_v9 = vpop.f32.mrf.mxu1 }
 0xb6c   :  { %1613 = vrot.lane.b32.xlu1 %v1589_v9, %s5550_s30  ;;  %v4075_v9 = vld [vmem:[%s5524_s11] ss:$0 sm:$0xff] }
 0xb6d   :  { %v4375_v10 = vpop.f32.mrf.mxu1 }
 0xbda   :  { %v1612_v19 = vpop.permute.xlu0 %1611 }
 0xbdb   :  { %v1623_v20 = vsel %vm1622_vm3, %v1620_v18, %v1612_v19 }
 0xbdc   :  { %4384 = vmatprep.mubr.msk.f32.mxu0 %vm108_vm0, %v1623_v20 }
 0xbde   :  { %v1614_v23 = vpop.permute.xlu1 %1613 }
 0xbdf   :  { %v1624_v24 = vsel %vm1622_vm3, %v1621_v22, %v1614_v23 }
 0xbe0   :  { %4385 = vmatmul.mubr.msk.f32.vlgmr.msra.gmra.mxu0 %vm108_vm0, %v1624_v24 }
 0xbe1   :  { %4399 = vmatpush3.msra.mxu0 %v1872_v2 }
 0xbe2   :  { %4400 = vmatprep.subr.mxu0 %v1871_v3 }
 0xbe3   :  { %4401 = vmatpush3.msra.mxu0 %v1871_v3  ;;  %v4088_v3 = vld [vmem:[%s5518_s5 + $0x1] ss:$0 sm:$0xff] }
 0xbe4   :  { %4402 = vmatprep.subr.mxu0 %v1870_v40 }
 0xbe5   :  { %4403 = vmatpush3.msra.mxu0 %v1870_v40 }
 0xbe6   :  { %4404 = vmatprep.subr.mxu0 %v1869_v4 }
 0xbe7   :  { %4405 = vmatpush3.msra.mxu0 %v1869_v4 }
 0xbe8   :  { %4406 = vmatprep.subr.mxu0 %v1868_v5 }
 0xbe9   :  { %4407 = vmatpush3.msra.mxu0 %v1868_v5 }
 0xbea   :  { %4408 = vmatprep.subr.mxu0 %v1867_v6 }
 0xbeb   :  { %4409 = vmatpush3.msra.mxu0 %v1867_v6 }
 0xbec   :  { %4410 = vmatprep.subr.mxu0 %v1866_v7 }
 0xbed   :  { %4411 = vmatpush3.msra.mxu0 %v1866_v7 }
 0xbee   :  { %4412 = vmatprep.subr.mxu0 %v1865_v8 }
 0xbef   :  { %4413 = vmatpush3.msra.mxu0 %v1865_v8 }
 0xbf0   :  { %4438 = vmatprep.subr.mxu0 %v4756_v35 }
 0xca0   :  { %v4386_v25 = vpop.f32.mrf.mxu0 }
 0xca1   :  { %v1714_v26 = vadd.f32 %v4386_v25, %v4070_v13  ;;  %v4078_v25 = vld [vmem:[%s5526_s13] ss:$0 sm:$0xff] }
 0xca2   :  { %v1708_v27 = vpop.f32.mrf.mxu0 }
 0xca3   :  { %v1709_v28 = vadd.f32 %v4070_v13, %v1708_v27  ;;  %v1718_v29 = vadd.f32 %v1714_v26, %v4909_v34 }
 0xca5   :  { %v1724_v30 = vsel %vm108_vm0, %v1718_v29, 0.0  ;;  %v1717_v15 = vadd.f32 %v1709_v28, %v4905_v32  ;;  %v1766_v32 = vld [vmem:[%s5523_s10 + $0x18] sm:$0xff] }
 0xca6   :  { %1725 = vadd.xlane.f32.xlu1 %v1724_v30  ;;  %4387 = vmatprep.subr.mxu1 %v1766_v32 }
 0xca7   :  { %v1721_v31 = vsel %vm108_vm0, %v1717_v15, 0.0  ;;  %4388 = vmatpush3.msra.mxu1 %v1766_v32 }
 0xca8   :  { %1722 = vadd.xlane.f32.xlu0 %v1721_v31  ;;  %4389 = vmatprep.subr.mxu1 %v1765_v47 }
 0xca9   :  { %4390 = vmatpush3.msra.mxu1 %v1765_v47  ;;  %v4086_v47 = vld [vmem:[%s5560_s19 + $0x38] sm:$0xff] }
 0xcaa   :  { %4391 = vmatprep.subr.mxu1 %v1764_v48 }
 0xcab   :  { %4392 = vmatpush3.msra.mxu1 %v1764_v48  ;;  %v4085_v48 = vld [vmem:[%s5560_s19 + $0x30] sm:$0xff] }
 0xcac   :  { %4393 = vmatprep.subr.mxu1 %v1763_v50 }
 0xcad   :  { %4394 = vmatpush3.msra.mxu1 %v1763_v50  ;;  %v4084_v50 = vld [vmem:[%s5560_s19 + $0x28] sm:$0xff] }
 0xcae   :  { %4417 = vmatprep.subr.mxu1 %v4086_v47 }
 0xd2f   :  { %v1726_v33 = vpop.xlane.xlu1 %1725 }
 0xd30   :  { %v1728_v36 = vmul.f32 0.03125, %v1726_v33 }
 0xd31   :  { %v1723_v37 = vpop.xlane.xlu0 %1722 }
 0xd32   :  { %v1727_v39 = vmul.f32 0.03125, %v1723_v37  ;;  %v1730_v41 = vsub.f32 %v1718_v29, %v1728_v36 }
 0xd34   :  { %v1729_v42 = vsub.f32 %v1717_v15, %v1727_v39  ;;  %v1732_v46 = vmul.f32 %v1730_v41, %v1730_v41 }
 0xd36   :  { %v1731_v43 = vmul.f32 %v1729_v42, %v1729_v42  ;;  %v1736_v34 = vsel %vm108_vm0, %v1732_v46, 0.0 }
 0xd38   :  { %v1733_v45 = vsel %vm108_vm0, %v1731_v43, 0.0 }
 0xd39   :  { %1734 = vadd.xlane.f32.xlu0 %v1733_v45 }
 0xd3d   :  { %1737 = vadd.xlane.f32.xlu0 %v1736_v34 }
 0xdc2   :  { %v1735_v51 = vpop.xlane.xlu0 %1734 }
 0xdc3   :  { %v1739_v52 = vmul.f32 0.03125, %v1735_v51  ;;  %v4083_v51 = vld [vmem:[%s5560_s19 + $0x20] sm:$0xff] }
 0xdc5   :  { %v1741_v53 = vadd.f32 1e-12, %v1739_v52 }
 0xdc6   :  { %v1738_v54 = vpop.xlane.xlu0 %1737 }
 0xdc7   :  { %4627 = vrsqrt.f32 %v1741_v53  ;;  %v1740_v55 = vmul.f32 0.03125, %v1738_v54 }
 0xdc9   :  { %v1742_v57 = vadd.f32 1e-12, %v1740_v55 }
 0xdcb   :  { %4629 = vrsqrt.f32 %v1742_v57 }
 0xdd4   :  { %v4628_v59 = vpop.eup %4627 }
 0xdd5   :  { %v1745_v60 = vmul.f32 %v4628_v59, %v1729_v42 }
 0xdd7   :  { %v1753_v58 = vmul.f32 %v4073_v38, %v1745_v60  ;;  %v4081_v60 = vld [vmem:[%s5527_s14] ss:$0 sm:$0xff] }
 0xdd8   :  { %v4630_v61 = vpop.eup %4629 }
 0xdd9   :  { %v1746_v62 = vmul.f32 %v4630_v61, %v1730_v41  ;;  %v1761_v63 = vadd.f32 %v4074_v56, %v1753_v58 }
 0xddb   :  { %v1754_v0 = vmul.f32 %v4073_v38, %v1746_v62  ;;  %4395 = vmatprep.mubr.msk.f32.mxu1 %vm108_vm0, %v1761_v63 }
 0xddd   :  { %v1762_v1 = vadd.f32 %v4074_v56, %v1754_v0 }
 0xddf   :  { %4396 = vmatmul.mubr.msk.f32.vlgmr.msra.gmra.mxu1 %vm108_vm0, %v1762_v1 }
 0xde0   :  { %4418 = vmatpush3.msra.mxu1 %v4086_v47 }
 0xde1   :  { %4419 = vmatprep.subr.mxu1 %v4085_v48 }
 0xde2   :  { %4420 = vmatpush3.msra.mxu1 %v4085_v48 }
 0xde3   :  { %4421 = vmatprep.subr.mxu1 %v4084_v50 }
 0xde4   :  { %4422 = vmatpush3.msra.mxu1 %v4084_v50 }
 0xde5   :  { %4423 = vmatprep.subr.mxu1 %v4083_v51 }
 0xde6   :  { %4424 = vmatpush3.msra.mxu1 %v4083_v51  ;;  %v5273_v51 = vld [vmem:[%s5561_s27] ss:$0 sm:$0xff] }
 0xde7   :  { %4428 = vmatprep.subr.mxu1 %v4756_v35 }
 0xe9f   :  { %v4397_v10 = vpop.f32.mrf.mxu1 }
 0xea0   :  { %v1852_v11 = vadd.f32 %v4397_v10, %v4075_v9 }
 0xea1   :  { %v1846_v12 = vpop.f32.mrf.mxu1 }
 0xea2   :  { %v1858_v14 = vmul.f32 0.70710677, %v1852_v11  ;;  %v1847_v16 = vadd.f32 %v4075_v9, %v1846_v12  ;;  %v1856_v23 = vmul.f32 0.5, %v1852_v11 }
 0xea4   :  { %4631 = verf.f32 %v1858_v14  ;;  %v1857_v17 = vmul.f32 0.70710677, %v1847_v16  ;;  %v1855_v21 = vmul.f32 0.5, %v1847_v16 }
 0xea6   :  { %4633 = verf.f32 %v1857_v17 }
 0xeb1   :  { %v4632_v18 = vpop.eup %4631 }
 0xeb2   :  { %v1862_v20 = vadd.f32 1.0, %v4632_v18 }
 0xeb3   :  { %v4634_v19 = vpop.eup %4633 }
 0xeb4   :  { %v1861_v22 = vadd.f32 1.0, %v4634_v19  ;;  %v1864_v13 = vmul.f32 %v1862_v20, %v1856_v23 }
 0xeb6   :  { %v1863_v24 = vmul.f32 %v1861_v22, %v1855_v21 }
 0xeb8   :  { %4414 = vmatprep.mubr.msk.f32.mxu0 %vm1880_vm5, %v1863_v24 }
 0xeb9   :  { %4415 = vmatmul.mubr.msk.f32.vlgmr.msra.gmra.mxu0 %vm1880_vm5, %v1864_v13 }
 0xeba   :  { %4440 = vmatprep.mubr.msk.f32.mxu0 %vm4757_vm1, %v4756_v35 }
 0xf79   :  { %v4416_v26 = vpop.f32.mrf.mxu0 }
 0xf7a   :  { %v1959_v27 = vadd.f32 %v4416_v26, %v4078_v25 }
 0xf7b   :  { %v1953_v28 = vpop.f32.mrf.mxu0 }
 0xf7c   :  { %v1954_v29 = vadd.f32 %v4078_v25, %v1953_v28  ;;  %v1963_v30 = vadd.f32 %v1959_v27, %v1762_v1 }
 0xf7e   :  { %v1969_v15 = vsel %vm108_vm0, %v1963_v30, 0.0  ;;  %v1962_v31 = vadd.f32 %v1954_v29, %v1761_v63  ;;  %v4082_v63 = vld [vmem:[%s5528_s15] ss:$0 sm:$0xff] }
 0xf7f   :  { %1970 = vadd.xlane.f32.xlu1 %v1969_v15 }
 0xf80   :  { %v1966_v33 = vsel %vm108_vm0, %v1962_v31, 0.0 }
 0xf81   :  { %1967 = vadd.xlane.f32.xlu0 %v1966_v33 }
0x1008   :  { %v1971_v36 = vpop.xlane.xlu1 %1970 }
0x1009   :  { %v1973_v37 = vmul.f32 0.03125, %v1971_v36 }
0x100a   :  { %v1968_v39 = vpop.xlane.xlu0 %1967 }
0x100b   :  { %v1975_v41 = vsub.f32 %v1963_v30, %v1973_v37  ;;  %v1972_v42 = vmul.f32 0.03125, %v1968_v39 }
0x100d   :  { %v1974_v43 = vsub.f32 %v1962_v31, %v1972_v42  ;;  %v1977_v45 = vmul.f32 %v1975_v41, %v1975_v41 }
0x100f   :  { %v1981_v46 = vsel %vm108_vm0, %v1977_v45, 0.0  ;;  %v1976_v34 = vmul.f32 %v1974_v43, %v1974_v43 }
0x1010   :  { %1982 = vadd.xlane.f32.xlu1 %v1981_v46 }
0x1011   :  { %v1978_v32 = vsel %vm108_vm0, %v1976_v34, 0.0 }
0x1012   :  { %1979 = vadd.xlane.f32.xlu0 %v1978_v32 }
0x1099   :  { %v1983_v52 = vpop.xlane.xlu1 %1982 }
0x109a   :  { %v1985_v53 = vmul.f32 0.03125, %v1983_v52 }
0x109b   :  { %v1980_v54 = vpop.xlane.xlu0 %1979 }
0x109c   :  { %v1987_v55 = vadd.f32 1e-12, %v1985_v53  ;;  %v1984_v57 = vmul.f32 0.03125, %v1980_v54 }
0x109e   :  { %4635 = vrsqrt.f32 %v1987_v55  ;;  %v1986_v59 = vadd.f32 1e-12, %v1984_v57 }
0x10a0   :  { %4637 = vrsqrt.f32 %v1986_v59  ;;  %v5280_v59 = vld [vmem:[%s5561_s27 + $0x1] ss:$0 sm:$0xff]  ;;  %s5563_s27 = smov 48  }
0x10ab   :  { %v4636_v38 = vpop.eup %4635 }
0x10ac   :  { %v1991_v56 = vmul.f32 %v4636_v38, %v1975_v41 }
0x10ad   :  { %v4638_v58 = vpop.eup %4637 }
0x10ae   :  { %v1990_v61 = vmul.f32 %v4638_v58, %v1974_v43  ;;  %v1999_v62 = vmul.f32 %v4081_v60, %v1991_v56 }
0x10b0   :  { %v1998_v0 = vmul.f32 %v4081_v60, %v1990_v61  ;;  %v5199_v2 = vadd.f32 %v4082_v63, %v1999_v62 }
0x10b2   :  { %v5197_v1 = vadd.f32 %v4082_v63, %v1998_v0 }
0x10b4   :  { %4425 = vmatprep.mubr.msk.f32.mxu1 %vm108_vm0, %v5197_v1 }
0x10b5   :  { %4426 = vmatmul.mubr.msk.f32.vlgmr.msra.gmra.mxu1 %vm108_vm0, %v5199_v2 }
0x10b6   :  { %4430 = vmatprep.mubr.msk.f32.mxu1 %vm4757_vm1, %v4756_v35 }
0x1175   :  { %v4427_v40 = vpop.f32.mrf.mxu1 }
0x1176   :  { %v5210_v4 = vadd.f32 %v4427_v40, %v4088_v3 }
0x1177   :  { %v2093_v5 = vpop.f32.mrf.mxu1 }
0x1178   :  { %v5212_v6 = vadd.f32 %v4088_v3, %v2093_v5  ;;  %2180 = vrot.lane.b32.xlu1 %v5210_v4, %s4758_s24 }
0x117a   :  { %2103 = vrot.lane.b32.xlu0 %v5212_v6, %s4758_s24 }
0x11ea   :  { %v2181_v8 = vpop.permute.xlu1 %2180 }
0x11ec   :  { %v2104_v7 = vpop.permute.xlu0 %2103 }
0x11ed   :  { %4429 = vmatpush3.xpose.msk.msra.mxu1 %vm249_vm2, %v2104_v7 }
0x11ee   :  { %4433 = vmatprep.subr.mxu1 %v4756_v35 }
0x11f0   :  { %4431 = vmatmul.mubr.msk.f32.vlgmr.msra.gmra.mxu1 %vm249_vm2, %v5212_v6 }
0x11f1   :  { %4434 = vmatpush3.xpose.msk.msra.mxu1 %vm249_vm2, %v2181_v8  ;;  %4435 = vmatprep.mubr.msk.f32.mxu1 %vm4757_vm1, %v4756_v35 }
0x11f2   :  { %4443 = vmatprep.subr.mxu1 %v4756_v35 }
0x11f4   :  { %4436 = vmatmul.mubr.msk.f32.vlgmr.msra.gmra.mxu1 %vm249_vm2, %v5210_v4 }
0x11f5   :  { %4445 = vmatprep.mubr.msk.f32.mxu1 %vm4757_vm1, %v4756_v35 }
0x12b0   :  { %v2175_v9 = vpop.f32.mrf.mxu1 }
0x12b1   :  { %v2256_v10 = vmul.f32 0.35355338, %v2175_v9 }
0x12b2   :  { %v4432_v11 = vpop.f32.mrf.mxu1 }
0x12b3   :  { %v2258_v12 = vadd.f32 %v4945_v44, %v2256_v10 }
0x12b4   :  { %v2252_v14 = vpop.f32.mrf.mxu1 }
0x12b5   :  { %v2257_v16 = vmul.f32 0.35355338, %v2252_v14  ;;  %v2260_v17 = vsel %vm249_vm2, %v2258_v12, -inf }
0x12b6   :  { %2261 = vmax.xlane.f32.xlu1 %v2260_v17  ;;  %v4437_v18 = vpop.f32.mrf.mxu1 }
0x12b7   :  { %v2259_v19 = vadd.f32 %v4951_v49, %v2257_v16 }
0x12b9   :  { %v2263_v20 = vsel %vm249_vm2, %v2259_v19, -inf }
0x12ba   :  { %2264 = vmax.xlane.f32.xlu0 %v2263_v20 }
0x12c7   :  { %2358 = vrot.lane.b32.xlu1 %v5210_v4, %s4759_s4 }
0x12cb   :  { %2436 = vrot.lane.b32.xlu1 %v5212_v6, %s4760_s29 }
0x12cf   :  { %2514 = vrot.lane.b32.xlu1 %v5210_v4, %s4760_s29 }
0x133f   :  { %v2262_v44 = vpop.xlane.xlu1 %2261 }
0x1340   :  { %v2266_v21 = vsub.f32 %v2258_v12, %v2262_v44 }
0x1342   :  { %v2268_v22 = vmul.f32 1.442695, %v2266_v21 }
0x1343   :  { %v2359_v23 = vpop.permute.xlu1 %2358  ;;  %v2265_v24 = vpop.xlane.xlu0 %2264 }
0x1344   :  { %4639 = vpow2.f32 %v2268_v22  ;;  %v2267_v13 = vsub.f32 %v2259_v19, %v2265_v24  ;;  %4444 = vmatpush3.msra.mxu1 %v2359_v23 }
0x1345   :  { %4453 = vmatprep.subr.mxu1 %v4756_v35 }
0x1346   :  { %v2270_v49 = vmul.f32 1.442695, %v2267_v13 }
0x1347   :  { %v2437_v29 = vpop.permute.xlu1 %2436 }
0x1348   :  { %4641 = vpow2.f32 %v2270_v49 }
0x134b   :  { %v2515_v30 = vpop.permute.xlu1 %2514 }
0x1351   :  { %v4640_v25 = vpop.eup %4639 }
0x1352   :  { %v2272_v26 = vsel %vm249_vm2, %v4640_v25, 0.0 }
0x1353   :  { %2273 = vadd.xlane.f32.xlu0 %v2272_v26 }
0x1355   :  { %v4642_v27 = vpop.eup %4641 }
0x1356   :  { %v2275_v28 = vsel %vm249_vm2, %v4642_v27, 0.0 }
0x1357   :  { %2276 = vadd.xlane.f32.xlu1 %v2275_v28 }
0x1368   :  { %2512 = vrot.lane.b32.xlu1 %v5210_v4, %s4761_s0 }
0x1369   :  { %2282 = vrot.lane.b32.xlu0 %v5212_v6, %s4759_s4  ;;  %s5569_s4 = smov 24  }
0x136d   :  { %2434 = vrot.lane.b32.xlu0 %v5212_v6, %s4761_s0  ;;  %s5562_s0 = smov 112  }
0x13dc   :  { %v2274_v15 = vpop.xlane.xlu0 %2273 }
0x13dd   :  { %4643 = vrcp.f32 %v2274_v15 }
0x13e0   :  { %v2277_v31 = vpop.xlane.xlu1 %2276  ;;  %v2283_v33 = vpop.permute.xlu0 %2282 }
0x13e1   :  { %4645 = vrcp.f32 %v2277_v31  ;;  %4439 = vmatpush3.msra.mxu0 %v2283_v33 }
0x13e2   :  { %4448 = vmatprep.subr.mxu0 %v4756_v35 }
0x13e4   :  { %v2435_v42 = vpop.permute.xlu0 %2434  ;;  %v2513_v43 = vpop.permute.xlu1 %2512 }
0x13ea   :  { %v4644_v36 = vpop.eup %4643 }
0x13eb   :  { %v2280_v37 = vmul.f32 %v4644_v36, %v4640_v25 }
0x13ed   :  { %4441 = vmatmul.mubr.msk.f32.vlgmr.msra.gmra.mxu0 %vm249_vm2, %v2280_v37 }
0x13ee   :  { %v4646_v39 = vpop.eup %4645  ;;  %4449 = vmatpush3.xpose.msk.msra.mxu0 %vm249_vm2, %v2437_v29  ;;  %4450 = vmatprep.mubr.msk.f32.mxu0 %vm4757_vm1, %v4756_v35 }
0x13ef   :  { %v2281_v41 = vmul.f32 %v4646_v39, %v4642_v27  ;;  %4458 = vmatprep.subr.mxu0 %v4756_v35 }
0x13f1   :  { %4446 = vmatmul.mubr.msk.f32.vlgmr.msra.gmra.mxu1 %vm249_vm2, %v2281_v41  ;;  %4451 = vmatmul.mubr.msk.f32.vlgmr.msra.gmra.mxu0 %vm249_vm2, %v2435_v42 }
0x13f2   :  { %4454 = vmatpush3.xpose.msk.msra.mxu1 %vm249_vm2, %v2515_v30  ;;  %4455 = vmatprep.mubr.msk.f32.mxu1 %vm4757_vm1, %v4756_v35 }
0x13f3   :  { %4463 = vmatprep.subr.mxu1 %v4756_v35  ;;  %4460 = vmatprep.mubr.msk.f32.mxu0 %vm4757_vm1, %v4756_v35 }
0x13f5   :  { %4456 = vmatmul.mubr.msk.f32.vlgmr.msra.gmra.mxu1 %vm249_vm2, %v2513_v43 }
0x13f6   :  { %4465 = vmatprep.mubr.msk.f32.mxu1 %vm4757_vm1, %v4756_v35 }
0x14ad   :  { %v5266_v45 = vpop.f32.mrf.mxu0 }
0x14af   :  { %v4442_v46 = vpop.f32.mrf.mxu0 }
0x14b1   :  { %v5268_v34 = vpop.f32.mrf.mxu1  ;;  %v2508_v32 = vpop.f32.mrf.mxu0 }
0x14b2   :  { %v2590_v47 = vmul.f32 0.35355338, %v2508_v32 }
0x14b3   :  { %v4447_v48 = vpop.f32.mrf.mxu1  ;;  %v4452_v50 = vpop.f32.mrf.mxu0 }
0x14b4   :  { %v2592_v52 = vadd.f32 %v5273_v51, %v2590_v47 }
0x14b5   :  { %v2586_v53 = vpop.f32.mrf.mxu1 }
0x14b6   :  { %v2591_v54 = vmul.f32 0.35355338, %v2586_v53  ;;  %v2594_v55 = vsel %vm249_vm2, %v2592_v52, -inf }
0x14b7   :  { %2595 = vmax.xlane.f32.xlu0 %v2594_v55  ;;  %v4457_v57 = vpop.f32.mrf.mxu1 }
0x14b8   :  { %v2593_v38 = vadd.f32 %v5280_v59, %v2591_v54 }
0x14ba   :  { %v2597_v60 = vsel %vm249_vm2, %v2593_v38, -inf }
0x14bb   :  { %2598 = vmax.xlane.f32.xlu1 %v2597_v60 }
0x14cc   :  { %2692 = vrot.lane.b32.xlu1 %v5210_v4, %s4762_s21 }
0x14cd   :  { %2616 = vrot.lane.b32.xlu0 %v5212_v6, %s4762_s21  ;;  %s5564_s21 = smov 72  }
0x14d0   :  { %2770 = vrot.lane.b32.xlu1 %v5212_v6, %s4763_s1 }
0x14d4   :  { %2848 = vrot.lane.b32.xlu1 %v5210_v4, %s4763_s1  ;;  %s5565_s1 = smov 104  }
0x14d8   :  { %2846 = vrot.lane.b32.xlu1 %v5210_v4, %s5562_s0 }
0x1540   :  { %v2596_v56 = vpop.xlane.xlu0 %2595 }
0x1541   :  { %v2600_v58 = vsub.f32 %v2592_v52, %v2596_v56 }
0x1543   :  { %v2602_v61 = vmul.f32 1.442695, %v2600_v58 }
0x1544   :  { %v2617_v62 = vpop.permute.xlu0 %2616  ;;  %v2599_v63 = vpop.xlane.xlu1 %2598 }
0x1545   :  { %4647 = vpow2.f32 %v2602_v61  ;;  %v2601_v0 = vsub.f32 %v2593_v38, %v2599_v63  ;;  %4459 = vmatpush3.msra.mxu0 %v2617_v62 }
0x1546   :  { %4468 = vmatprep.subr.mxu0 %v4756_v35 }
0x1547   :  { %v2604_v3 = vmul.f32 1.442695, %v2601_v0 }
0x1548   :  { %v2693_v40 = vpop.permute.xlu1 %2692 }
0x1549   :  { %4649 = vpow2.f32 %v2604_v3  ;;  %4464 = vmatpush3.msra.mxu1 %v2693_v40 }
0x154a   :  { %4473 = vmatprep.subr.mxu1 %v4756_v35 }
0x154c   :  { %v2771_v12 = vpop.permute.xlu1 %2770 }
0x1550   :  { %v2849_v18 = vpop.permute.xlu1 %2848 }
0x1552   :  { %v4648_v5 = vpop.eup %4647 }
0x1553   :  { %v2606_v7 = vsel %vm249_vm2, %v4648_v5, 0.0 }
0x1554   :  { %2607 = vadd.xlane.f32.xlu0 %v2606_v7  ;;  %v2847_v44 = vpop.permute.xlu1 %2846 }
0x1556   :  { %v4650_v8 = vpop.eup %4649 }
0x1557   :  { %v2609_v9 = vsel %vm249_vm2, %v4650_v8, 0.0 }
0x1558   :  { %2610 = vadd.xlane.f32.xlu0 %v2609_v9 }
0x156e   :  { %2768 = vrot.lane.b32.xlu0 %v5212_v6, %s5562_s0 }
0x15dd   :  { %v2608_v10 = vpop.xlane.xlu0 %2607 }
0x15de   :  { %4651 = vrcp.f32 %v2608_v10 }
0x15e1   :  { %v2611_v11 = vpop.xlane.xlu0 %2610 }
0x15e2   :  { %4653 = vrcp.f32 %v2611_v11 }
0x15e5   :  { %v2769_v20 = vpop.permute.xlu0 %2768 }
0x15eb   :  { %v4652_v14 = vpop.eup %4651 }
0x15ec   :  { %v2614_v16 = vmul.f32 %v4652_v14, %v4648_v5 }
0x15ee   :  { %4461 = vmatmul.mubr.msk.f32.vlgmr.msra.gmra.mxu0 %vm249_vm2, %v2614_v16 }
0x15ef   :  { %v4654_v17 = vpop.eup %4653  ;;  %4469 = vmatpush3.xpose.msk.msra.mxu0 %vm249_vm2, %v2771_v12  ;;  %4470 = vmatprep.mubr.msk.f32.mxu0 %vm4757_vm1, %v4756_v35 }
0x15f0   :  { %v2615_v19 = vmul.f32 %v4654_v17, %v4650_v8  ;;  %4478 = vmatprep.subr.mxu0 %v4756_v35 }
0x15f2   :  { %4466 = vmatmul.mubr.msk.f32.vlgmr.msra.gmra.mxu1 %vm249_vm2, %v2615_v19  ;;  %4471 = vmatmul.mubr.msk.f32.vlgmr.msra.gmra.mxu0 %vm249_vm2, %v2769_v20 }
0x15f3   :  { %4474 = vmatpush3.xpose.msk.msra.mxu1 %vm249_vm2, %v2849_v18  ;;  %4475 = vmatprep.mubr.msk.f32.mxu1 %vm4757_vm1, %v4756_v35 }
0x15f4   :  { %4483 = vmatprep.subr.mxu1 %v4756_v35  ;;  %4480 = vmatprep.mubr.msk.f32.mxu0 %vm4757_vm1, %v4756_v35 }
0x15f6   :  { %4476 = vmatmul.mubr.msk.f32.vlgmr.msra.gmra.mxu1 %vm249_vm2, %v2847_v44 }
0x15f7   :  { %4485 = vmatprep.mubr.msk.f32.mxu1 %vm4757_vm1, %v4756_v35 }
0x16ae   :  { %v5316_v21 = vpop.f32.mrf.mxu0 }
0x16b0   :  { %v4462_v22 = vpop.f32.mrf.mxu0 }
0x16b2   :  { %v5318_v23 = vpop.f32.mrf.mxu1  ;;  %v2842_v24 = vpop.f32.mrf.mxu0 }
0x16b3   :  { %v2924_v13 = vmul.f32 0.35355338, %v2842_v24 }
0x16b4   :  { %v4467_v49 = vpop.f32.mrf.mxu1  ;;  %v4472_v25 = vpop.f32.mrf.mxu0 }
0x16b5   :  { %v2926_v26 = vadd.f32 %v5273_v51, %v2924_v13 }
0x16b6   :  { %v2920_v27 = vpop.f32.mrf.mxu1 }
0x16b7   :  { %v2925_v28 = vmul.f32 0.35355338, %v2920_v27  ;;  %v2928_v29 = vsel %vm249_vm2, %v2926_v26, -inf }
0x16b8   :  { %2929 = vmax.xlane.f32.xlu0 %v2928_v29  ;;  %v4477_v30 = vpop.f32.mrf.mxu1  ;;  %v4117_v29 = vld [vmem:[%s5519_s6 + $0x30] sm:$0xff] }
0x16b9   :  { %v2927_v15 = vadd.f32 %v5280_v59, %v2925_v28  ;;  %v4116_v30 = vld [vmem:[%s5519_s6 + $0x28] sm:$0xff] }
0x16bb   :  { %v2931_v31 = vsel %vm249_vm2, %v2927_v15, -inf }
0x16bc   :  { %2932 = vmax.xlane.f32.xlu1 %v2931_v31 }
0x16cd   :  { %3026 = vrot.lane.b32.xlu1 %v5210_v4, %s5563_s27 }
0x16ce   :  { %2950 = vrot.lane.b32.xlu0 %v5212_v6, %s5563_s27 }
0x16d1   :  { %3104 = vrot.lane.b32.xlu1 %v5212_v6, %s5564_s21 }
0x16d5   :  { %3182 = vrot.lane.b32.xlu1 %v5210_v4, %s5564_s21 }
0x16d9   :  { %3180 = vrot.lane.b32.xlu1 %v5210_v4, %s5565_s1 }
0x1741   :  { %v2930_v33 = vpop.xlane.xlu0 %2929 }
0x1742   :  { %v2934_v36 = vsub.f32 %v2926_v26, %v2930_v33 }
0x1744   :  { %v2936_v37 = vmul.f32 1.442695, %v2934_v36 }
0x1745   :  { %v2951_v39 = vpop.permute.xlu0 %2950  ;;  %v2933_v41 = vpop.xlane.xlu1 %2932 }
0x1746   :  { %4655 = vpow2.f32 %v2936_v37  ;;  %v2935_v42 = vsub.f32 %v2927_v15, %v2933_v41  ;;  %4479 = vmatpush3.msra.mxu0 %v2951_v39  ;;  %v4115_v15 = vld [vmem:[%s5519_s6 + $0x20] sm:$0xff] }
0x1747   :  { %4488 = vmatprep.subr.mxu0 %v4756_v35 }
0x1748   :  { %v2938_v43 = vmul.f32 1.442695, %v2935_v42 }
0x1749   :  { %v3027_v46 = vpop.permute.xlu1 %3026 }
0x174a   :  { %4657 = vpow2.f32 %v2938_v43  ;;  %4484 = vmatpush3.msra.mxu1 %v3027_v46 }
0x174b   :  { %4493 = vmatprep.subr.mxu1 %v4756_v35 }
0x174d   :  { %v3105_v54 = vpop.permute.xlu1 %3104 }
0x1751   :  { %v3183_v60 = vpop.permute.xlu1 %3182 }
0x1753   :  { %v4656_v32 = vpop.eup %4655 }
0x1754   :  { %v2940_v47 = vsel %vm249_vm2, %v4656_v32, 0.0 }
0x1755   :  { %2941 = vadd.xlane.f32.xlu0 %v2940_v47  ;;  %v3181_v61 = vpop.permute.xlu1 %3180 }
0x1757   :  { %v4658_v48 = vpop.eup %4657 }
0x1758   :  { %v2943_v50 = vsel %vm249_vm2, %v4658_v48, 0.0 }
0x1759   :  { %2944 = vadd.xlane.f32.xlu0 %v2943_v50 }
0x176f   :  { %3102 = vrot.lane.b32.xlu0 %v5212_v6, %s5565_s1 }
0x17de   :  { %v2942_v52 = vpop.xlane.xlu0 %2941 }
0x17df   :  { %4659 = vrcp.f32 %v2942_v52 }
0x17e2   :  { %v2945_v53 = vpop.xlane.xlu0 %2944 }
0x17e3   :  { %4661 = vrcp.f32 %v2945_v53 }
0x17e6   :  { %v3103_v58 = vpop.permute.xlu0 %3102 }
0x17ec   :  { %v4660_v55 = vpop.eup %4659 }
0x17ed   :  { %v2948_v57 = vmul.f32 %v4660_v55, %v4656_v32 }
0x17ef   :  { %4481 = vmatmul.mubr.msk.f32.vlgmr.msra.gmra.mxu0 %vm249_vm2, %v2948_v57 }
0x17f0   :  { %v4662_v38 = vpop.eup %4661  ;;  %4489 = vmatpush3.xpose.msk.msra.mxu0 %vm249_vm2, %v3105_v54  ;;  %4490 = vmatprep.mubr.msk.f32.mxu0 %vm4757_vm1, %v4756_v35 }
0x17f1   :  { %v2949_v56 = vmul.f32 %v4662_v38, %v4658_v48  ;;  %4498 = vmatprep.subr.mxu0 %v4756_v35 }
0x17f3   :  { %4486 = vmatmul.mubr.msk.f32.vlgmr.msra.gmra.mxu1 %vm249_vm2, %v2949_v56  ;;  %4491 = vmatmul.mubr.msk.f32.vlgmr.msra.gmra.mxu0 %vm249_vm2, %v3103_v58 }
0x17f4   :  { %4494 = vmatpush3.xpose.msk.msra.mxu1 %vm249_vm2, %v3183_v60  ;;  %4495 = vmatprep.mubr.msk.f32.mxu1 %vm4757_vm1, %v4756_v35 }
0x17f5   :  { %4503 = vmatprep.subr.mxu1 %v4756_v35  ;;  %4500 = vmatprep.mubr.msk.f32.mxu0 %vm4757_vm1, %v4756_v35 }
0x17f7   :  { %4496 = vmatmul.mubr.msk.f32.vlgmr.msra.gmra.mxu1 %vm249_vm2, %v3181_v61 }
0x17f8   :  { %4505 = vmatprep.mubr.msk.f32.mxu1 %vm4757_vm1, %v4756_v35 }
0x18af   :  { %v3022_v62 = vpop.f32.mrf.mxu0 }
0x18b1   :  { %v4482_v63 = vpop.f32.mrf.mxu0 }
0x18b3   :  { %v3098_v0 = vpop.f32.mrf.mxu1  ;;  %v3176_v3 = vpop.f32.mrf.mxu0 }
0x18b4   :  { %v3258_v40 = vmul.f32 0.35355338, %v3176_v3 }
0x18b5   :  { %v4487_v5 = vpop.f32.mrf.mxu1  ;;  %v4492_v7 = vpop.f32.mrf.mxu0 }
0x18b6   :  { %v3260_v8 = vadd.f32 %v5273_v51, %v3258_v40 }
0x18b7   :  { %v3254_v9 = vpop.f32.mrf.mxu1 }
0x18b8   :  { %v3259_v10 = vmul.f32 0.35355338, %v3254_v9  ;;  %v3262_v11 = vsel %vm249_vm2, %v3260_v8, -inf }
0x18b9   :  { %3263 = vmax.xlane.f32.xlu0 %v3262_v11  ;;  %v4497_v12 = vpop.f32.mrf.mxu1  ;;  %v4128_v11 = vld [vmem:[%s5523_s10 + $0x28] sm:$0xff] }
0x18ba   :  { %v3261_v14 = vadd.f32 %v5280_v59, %v3259_v10  ;;  %v4129_v10 = vld [vmem:[%s5523_s10 + $0x30] sm:$0xff]  ;;  %v4127_v12 = vld [vmem:[%s5523_s10 + $0x20] sm:$0xff] }
0x18bc   :  { %v3265_v16 = vsel %vm249_vm2, %v3261_v14, -inf }
0x18bd   :  { %3266 = vmax.xlane.f32.xlu1 %v3265_v16 }
0x18ce   :  { %3360 = vrot.lane.b32.xlu1 %v5210_v4, %s5566_s28 }
0x18d2   :  { %3438 = vrot.lane.b32.xlu1 %v5316_v21, %s5567_s22 }
0x18d6   :  { %3440 = vrot.lane.b32.xlu1 %v5318_v23, %s5567_s22 }
0x18da   :  { %3448 = vrot.lane.b32.xlu1 %v3098_v0, %s5568_s23 }
0x1942   :  { %v3264_v51 = vpop.xlane.xlu0 %3263 }
0x1943   :  { %v3268_v17 = vsub.f32 %v3260_v8, %v3264_v51 }
0x1945   :  { %v3270_v18 = vmul.f32 1.442695, %v3268_v17 }
0x1946   :  { %v3267_v19 = vpop.xlane.xlu1 %3266 }
0x1947   :  { %4663 = vpow2.f32 %v3270_v18  ;;  %v3269_v59 = vsub.f32 %v3261_v14, %v3267_v19 }
0x1949   :  { %v3272_v20 = vmul.f32 1.442695, %v3269_v59 }
0x194a   :  { %v3361_v44 = vpop.permute.xlu1 %3360 }
0x194b   :  { %4665 = vpow2.f32 %v3272_v20  ;;  %4504 = vmatpush3.msra.mxu1 %v3361_v44  ;;  %v4125_v20 = vld [vmem:[%s5521_s8 + $0x1] ss:$0 sm:$0xff] }
0x194e   :  { %v3439_v39 = vpop.permute.xlu1 %3438 }
0x194f   :  { %v3460_v43 = vsel %vm249_vm2, %v5266_v45, %v3439_v39  ;;  %v4120_v45 = vld [vmem:[%s5520_s7 + $0x1] ss:$0 sm:$0xff] }
0x1952   :  { %v3441_v41 = vpop.permute.xlu1 %3440 }
0x1953   :  { %v3461_v50 = vsel %vm249_vm2, %v5268_v34, %v3441_v41 }
0x1954   :  { %v4664_v22 = vpop.eup %4663 }
0x1955   :  { %v3274_v4 = vsel %vm249_vm2, %v4664_v22, 0.0 }
0x1956   :  { %3275 = vadd.xlane.f32.xlu0 %v3274_v4  ;;  %v3449_v46 = vpop.permute.xlu1 %3448 }
0x1957   :  { %v3463_v52 = vsel %vm1619_vm4, %v3461_v50, %v3449_v46 }
0x1958   :  { %v4666_v21 = vpop.eup %4665 }
0x1959   :  { %v3277_v24 = vsel %vm249_vm2, %v4666_v21, 0.0 }
0x195a   :  { %3278 = vadd.xlane.f32.xlu0 %v3277_v24 }
0x1970   :  { %3284 = vrot.lane.b32.xlu0 %v5212_v6, %s5566_s28  ;;  %v4118_v6 = vld [vmem:[%s5519_s6 + $0x38] sm:$0xff] }
0x1974   :  { %3446 = vrot.lane.b32.xlu0 %v3022_v62, %s5568_s23 }
0x19df   :  { %v3276_v23 = vpop.xlane.xlu0 %3275 }
0x19e0   :  { %4667 = vrcp.f32 %v3276_v23 }
0x19e3   :  { %v3279_v13 = vpop.xlane.xlu0 %3278 }
0x19e4   :  { %4669 = vrcp.f32 %v3279_v13 }
0x19e7   :  { %v3285_v49 = vpop.permute.xlu0 %3284 }
0x19e8   :  { %4499 = vmatpush3.msra.mxu0 %v3285_v49 }
0x19e9   :  { %4508 = vmatprep.subr.mxu0 %v4118_v6 }
0x19eb   :  { %v3447_v42 = vpop.permute.xlu0 %3446 }
0x19ec   :  { %v3462_v32 = vsel %vm1619_vm4, %v3460_v43, %v3447_v42 }
0x19ed   :  { %v4668_v25 = vpop.eup %4667 }
0x19ee   :  { %v3282_v26 = vmul.f32 %v4668_v25, %v4664_v22  ;;  %v4126_v22 = vld [vmem:[%s5522_s9 + $0x1] ss:$0 sm:$0xff]  ;;  %v4142_v25 = vld [vmem:[%s5525_s12 + $0x78] sm:$0xff] }
0x19f0   :  { %4501 = vmatmul.mubr.msk.f32.vlgmr.msra.gmra.mxu0 %vm249_vm2, %v3282_v26  ;;  %v4141_v26 = vld [vmem:[%s5525_s12 + $0x70] sm:$0xff] }
0x19f1   :  { %v4670_v27 = vpop.eup %4669  ;;  %4509 = vmatpush3.msra.mxu0 %v4118_v6  ;;  %v4138_v6 = vld [vmem:[%s5525_s12 + $0x58] sm:$0xff] }
0x19f2   :  { %v3283_v28 = vmul.f32 %v4670_v27, %v4666_v21  ;;  %4510 = vmatprep.subr.mxu0 %v4117_v29  ;;  %v4140_v27 = vld [vmem:[%s5525_s12 + $0x68] sm:$0xff] }
0x19f3   :  { %4511 = vmatpush3.msra.mxu0 %v4117_v29  ;;  %v4137_v29 = vld [vmem:[%s5525_s12 + $0x50] sm:$0xff] }
0x19f4   :  { %4506 = vmatmul.mubr.msk.f32.vlgmr.msra.gmra.mxu1 %vm249_vm2, %v3283_v28  ;;  %4512 = vmatprep.subr.mxu0 %v4116_v30  ;;  %v4139_v28 = vld [vmem:[%s5525_s12 + $0x60] sm:$0xff] }
0x19f5   :  { %4513 = vmatpush3.msra.mxu0 %v4116_v30  ;;  %v4136_v30 = vld [vmem:[%s5525_s12 + $0x48] sm:$0xff] }
0x19f6   :  { %4514 = vmatprep.subr.mxu0 %v4115_v15 }
0x19f7   :  { %4515 = vmatpush3.msra.mxu0 %v4115_v15  ;;  %v4135_v15 = vld [vmem:[%s5525_s12 + $0x40] sm:$0xff] }
0x19f8   :  { %4530 = vmatprep.subr.mxu0 %v4142_v25 }
0x1ab0   :  { %v3356_v31 = vpop.f32.mrf.mxu0 }
0x1ab1   :  { %3454 = vrot.lane.b32.xlu0 %v3356_v31, %s5569_s4  ;;  %v4132_v31 = vld [vmem:[%s5524_s11 + $0x1] ss:$0 sm:$0xff] }
0x1ab2   :  { %v4502_v33 = vpop.f32.mrf.mxu0 }
0x1ab4   :  { %v3432_v36 = vpop.f32.mrf.mxu1 }
0x1ab5   :  { %3456 = vrot.lane.b32.xlu1 %v3432_v36, %s5569_s4 }
0x1ab6   :  { %v4507_v37 = vpop.f32.mrf.mxu1 }
0x1b23   :  { %v3455_v47 = vpop.permute.xlu0 %3454 }
0x1b24   :  { %v3464_v48 = vsel %vm1622_vm3, %v3462_v32, %v3455_v47 }
0x1b25   :  { %4516 = vmatprep.mubr.msk.f32.mxu0 %vm108_vm0, %v3464_v48 }
0x1b27   :  { %v3457_v53 = vpop.permute.xlu1 %3456 }
0x1b28   :  { %v3465_v54 = vsel %vm1622_vm3, %v3463_v52, %v3457_v53 }
0x1b29   :  { %4517 = vmatmul.mubr.msk.f32.vlgmr.msra.gmra.mxu0 %vm108_vm0, %v3465_v54  ;;  %v4144_v54 = vld [vmem:[%s5526_s13 + $0x1] ss:$0 sm:$0xff] }
0x1b2a   :  { %4531 = vmatpush3.msra.mxu0 %v4142_v25 }
0x1b2b   :  { %4532 = vmatprep.subr.mxu0 %v4141_v26 }
0x1b2c   :  { %4533 = vmatpush3.msra.mxu0 %v4141_v26  ;;  %v3950_v26 = vld [vmem:[%s5531_s18 + $0x18] sm:$0xff] }
0x1b2d   :  { %4534 = vmatprep.subr.mxu0 %v4140_v27 }
0x1b2e   :  { %4535 = vmatpush3.msra.mxu0 %v4140_v27  ;;  %v3949_v27 = vld [vmem:[%s5531_s18 + $0x10] sm:$0xff] }
0x1b2f   :  { %4536 = vmatprep.subr.mxu0 %v4139_v28 }
0x1b30   :  { %4537 = vmatpush3.msra.mxu0 %v4139_v28  ;;  %v3948_v28 = vld [vmem:[%s5531_s18 + $0x8] sm:$0xff] }
0x1b31   :  { %4538 = vmatprep.subr.mxu0 %v4138_v6 }
0x1b32   :  { %4539 = vmatpush3.msra.mxu0 %v4138_v6  ;;  %v3947_v6 = vld [vmem:[%s5531_s18] sm:$0xff] }
0x1b33   :  { %4540 = vmatprep.subr.mxu0 %v4137_v29 }
0x1b34   :  { %4541 = vmatpush3.msra.mxu0 %v4137_v29  ;;  %v4151_v29 = vld [vmem:[%s5530_s17] ss:$0 sm:$0xff] }
0x1b35   :  { %4542 = vmatprep.subr.mxu0 %v4136_v30 }
0x1b36   :  { %4543 = vmatpush3.msra.mxu0 %v4136_v30 }
0x1b37   :  { %4544 = vmatprep.subr.mxu0 %v4135_v15 }
0x1b38   :  { %4545 = vmatpush3.msra.mxu0 %v4135_v15 }
0x1be9   :  { %v4518_v55 = vpop.f32.mrf.mxu0 }
0x1bea   :  { %v3557_v57 = vadd.f32 %v4518_v55, %v4120_v45 }
0x1beb   :  { %v3551_v38 = vpop.f32.mrf.mxu0 }
0x1bec   :  { %v3561_v60 = vadd.f32 %v3557_v57, %v5199_v2  ;;  %v3552_v56 = vadd.f32 %v4120_v45, %v3551_v38 }
0x1bee   :  { %v3560_v58 = vadd.f32 %v3552_v56, %v5197_v1  ;;  %v3569_v34 = vsel %vm108_vm0, %v3561_v60, 0.0  ;;  %v4130_v1 = vld [vmem:[%s5523_s10 + $0x38] sm:$0xff] }
0x1bef   :  { %3570 = vadd.xlane.f32.xlu1 %v3569_v34  ;;  %4519 = vmatprep.subr.mxu1 %v4130_v1 }
0x1bf0   :  { %v3566_v61 = vsel %vm108_vm0, %v3560_v58, 0.0  ;;  %4520 = vmatpush3.msra.mxu1 %v4130_v1  ;;  %v3860_v1 = vld [vmem:[%s5529_s16 + $0x10] sm:$0xff] }
0x1bf1   :  { %3567 = vadd.xlane.f32.xlu0 %v3566_v61  ;;  %4521 = vmatprep.subr.mxu1 %v4129_v10 }
0x1bf2   :  { %4522 = vmatpush3.msra.mxu1 %v4129_v10  ;;  %v3859_v10 = vld [vmem:[%s5529_s16 + $0x8] sm:$0xff] }
0x1bf3   :  { %4523 = vmatprep.subr.mxu1 %v4128_v11 }
0x1bf4   :  { %4524 = vmatpush3.msra.mxu1 %v4128_v11  ;;  %v3858_v11 = vld [vmem:[%s5529_s16] sm:$0xff] }
0x1bf5   :  { %4525 = vmatprep.subr.mxu1 %v4127_v12 }
0x1bf6   :  { %4526 = vmatpush3.msra.mxu1 %v4127_v12 }
0x1bf7   :  { %4549 = vmatprep.subr.mxu1 %v4756_v35 }
0x1c78   :  { %v3571_v62 = vpop.xlane.xlu1 %3570 }
0x1c79   :  { %v3573_v63 = vmul.f32 0.03125, %v3571_v62 }
0x1c7a   :  { %v3568_v0 = vpop.xlane.xlu0 %3567 }
0x1c7b   :  { %v3572_v3 = vmul.f32 0.03125, %v3568_v0  ;;  %v3575_v40 = vsub.f32 %v3561_v60, %v3573_v63 }
0x1c7d   :  { %v3574_v5 = vsub.f32 %v3560_v58, %v3572_v3  ;;  %v3577_v9 = vmul.f32 %v3575_v40, %v3575_v40 }
0x1c7f   :  { %v3576_v7 = vmul.f32 %v3574_v5, %v3574_v5  ;;  %v3581_v2 = vsel %vm108_vm0, %v3577_v9, 0.0 }
0x1c81   :  { %v3578_v8 = vsel %vm108_vm0, %v3576_v7, 0.0 }
0x1c82   :  { %3579 = vadd.xlane.f32.xlu0 %v3578_v8 }
0x1c86   :  { %3582 = vadd.xlane.f32.xlu0 %v3581_v2  ;;  %v3861_v2 = vld [vmem:[%s5529_s16 + $0x18] sm:$0xff] }
0x1d0b   :  { %v3580_v14 = vpop.xlane.xlu0 %3579 }
0x1d0c   :  { %v3584_v16 = vmul.f32 0.03125, %v3580_v14 }
0x1d0e   :  { %v3586_v51 = vadd.f32 1e-12, %v3584_v16 }
0x1d0f   :  { %v3583_v17 = vpop.xlane.xlu0 %3582 }
0x1d10   :  { %4671 = vrsqrt.f32 %v3586_v51  ;;  %v3585_v18 = vmul.f32 0.03125, %v3583_v17 }
0x1d12   :  { %v3587_v19 = vadd.f32 1e-12, %v3585_v18 }
0x1d14   :  { %4673 = vrsqrt.f32 %v3587_v19 }
0x1d1d   :  { %v4672_v59 = vpop.eup %4671 }
0x1d1e   :  { %v3590_v44 = vmul.f32 %v4672_v59, %v3574_v5  ;;  %v4149_v59 = vld [vmem:[%s5527_s14 + $0x1] ss:$0 sm:$0xff] }
0x1d20   :  { %v3598_v4 = vmul.f32 %v4125_v20, %v3590_v44 }
0x1d21   :  { %v4674_v21 = vpop.eup %4673 }
0x1d22   :  { %v3591_v24 = vmul.f32 %v4674_v21, %v3575_v40  ;;  %v3606_v23 = vadd.f32 %v4126_v22, %v3598_v4 }
0x1d24   :  { %v3599_v13 = vmul.f32 %v4125_v20, %v3591_v24  ;;  %4527 = vmatprep.mubr.msk.f32.mxu1 %vm108_vm0, %v3606_v23 }
0x1d26   :  { %v3607_v49 = vadd.f32 %v4126_v22, %v3599_v13  ;;  %v4150_v22 = vld [vmem:[%s5528_s15 + $0x1] ss:$0 sm:$0xff] }
0x1d28   :  { %4528 = vmatmul.mubr.msk.f32.vlgmr.msra.gmra.mxu1 %vm108_vm0, %v3607_v49 }
0x1d29   :  { %4557 = vmatprep.mubr.msk.f32.mxu1 %vm4757_vm1, %v4756_v35  ;;  %4550 = vmatpush3.msra.mxu1 %v3861_v2 }
0x1d2a   :  { %4551 = vmatprep.subr.mxu1 %v4756_v35 }
0x1d2b   :  { %4552 = vmatpush3.msra.mxu1 %v3860_v1 }
0x1d2c   :  { %4553 = vmatprep.subr.mxu1 %v4756_v35 }
0x1d2d   :  { %4554 = vmatpush3.msra.mxu1 %v3859_v10 }
0x1d2e   :  { %4555 = vmatprep.subr.mxu1 %v4756_v35 }
0x1d2f   :  { %4556 = vmatpush3.msra.mxu1 %v3858_v11 }
0x1d30   :  { %4560 = vmatprep.subr.mxu1 %v4756_v35 }
0x1de8   :  { %v4529_v33 = vpop.f32.mrf.mxu1 }
0x1de9   :  { %v3699_v36 = vadd.f32 %v4529_v33, %v4132_v31 }
0x1dea   :  { %v3693_v37 = vpop.f32.mrf.mxu1 }
0x1deb   :  { %v3705_v39 = vmul.f32 0.70710677, %v3699_v36  ;;  %v3694_v41 = vadd.f32 %v4132_v31, %v3693_v37  ;;  %v3703_v50 = vmul.f32 0.5, %v3699_v36  ;;  %v4153_v36 = vld [vmem:[#allocation2] ss:$0 sm:$0xff] }
0x1ded   :  { %4675 = verf.f32 %v3705_v39  ;;  %v3704_v42 = vmul.f32 0.70710677, %v3694_v41  ;;  %v3702_v47 = vmul.f32 0.5, %v3694_v41 }
0x1def   :  { %4677 = verf.f32 %v3704_v42 }
0x1dfa   :  { %v4676_v43 = vpop.eup %4675 }
0x1dfb   :  { %v3709_v32 = vadd.f32 1.0, %v4676_v43 }
0x1dfc   :  { %v4678_v46 = vpop.eup %4677 }
0x1dfd   :  { %v3708_v48 = vadd.f32 1.0, %v4678_v46  ;;  %v3711_v53 = vmul.f32 %v3709_v32, %v3703_v50 }
0x1dff   :  { %v3710_v52 = vmul.f32 %v3708_v48, %v3702_v47 }
0x1e01   :  { %4546 = vmatprep.mubr.msk.f32.mxu0 %vm1880_vm5, %v3710_v52 }
0x1e02   :  { %4547 = vmatmul.mubr.msk.f32.vlgmr.msra.gmra.mxu0 %vm1880_vm5, %v3711_v53 }
0x1ec2   :  { %v4548_v45 = vpop.f32.mrf.mxu0 }
0x1ec3   :  { %v3807_v55 = vadd.f32 %v4548_v45, %v4144_v54 }
0x1ec4   :  { %v3801_v57 = vpop.f32.mrf.mxu0 }
0x1ec5   :  { %v3811_v38 = vadd.f32 %v3807_v55, %v3607_v49  ;;  %v3802_v60 = vadd.f32 %v4144_v54, %v3801_v57 }
0x1ec7   :  { %v3810_v56 = vadd.f32 %v3802_v60, %v3606_v23  ;;  %v3819_v58 = vsel %vm108_vm0, %v3811_v38, 0.0 }
0x1ec8   :  { %3820 = vadd.xlane.f32.xlu0 %v3819_v58 }
0x1ec9   :  { %v3816_v34 = vsel %vm108_vm0, %v3810_v56, 0.0 }
0x1eca   :  { %3817 = vadd.xlane.f32.xlu1 %v3816_v34 }
0x1f51   :  { %v3821_v61 = vpop.xlane.xlu0 %3820 }
0x1f52   :  { %v3823_v62 = vmul.f32 0.03125, %v3821_v61 }
0x1f53   :  { %v3818_v63 = vpop.xlane.xlu1 %3817 }
0x1f54   :  { %v3825_v0 = vsub.f32 %v3811_v38, %v3823_v62  ;;  %v3822_v3 = vmul.f32 0.03125, %v3818_v63 }
0x1f56   :  { %v3824_v40 = vsub.f32 %v3810_v56, %v3822_v3  ;;  %v3827_v5 = vmul.f32 %v3825_v0, %v3825_v0 }
0x1f58   :  { %v3831_v7 = vsel %vm108_vm0, %v3827_v5, 0.0  ;;  %v3826_v8 = vmul.f32 %v3824_v40, %v3824_v40 }
0x1f59   :  { %3832 = vadd.xlane.f32.xlu0 %v3831_v7 }
0x1f5a   :  { %v3828_v9 = vsel %vm108_vm0, %v3826_v8, 0.0 }
0x1f5b   :  { %3829 = vadd.xlane.f32.xlu1 %v3828_v9 }
0x1fe2   :  { %v3833_v12 = vpop.xlane.xlu0 %3832 }
0x1fe3   :  { %v3835_v14 = vmul.f32 0.03125, %v3833_v12 }
0x1fe4   :  { %v3830_v16 = vpop.xlane.xlu1 %3829 }
0x1fe5   :  { %v3837_v51 = vadd.f32 1e-12, %v3835_v14  ;;  %v3834_v17 = vmul.f32 0.03125, %v3830_v16 }
0x1fe7   :  { %4679 = vrsqrt.f32 %v3837_v51  ;;  %v3836_v18 = vadd.f32 1e-12, %v3834_v17 }
0x1fe9   :  { %4681 = vrsqrt.f32 %v3836_v18 }
0x1ff4   :  { %v4680_v19 = vpop.eup %4679 }
0x1ff5   :  { %v3841_v20 = vmul.f32 %v4680_v19, %v3825_v0 }
0x1ff6   :  { %v4682_v44 = vpop.eup %4681 }
0x1ff7   :  { %v3840_v4 = vmul.f32 %v4682_v44, %v3824_v40  ;;  %v3849_v21 = vmul.f32 %v4149_v59, %v3841_v20 }
0x1ff9   :  { %v3848_v24 = vmul.f32 %v4149_v59, %v3840_v4  ;;  %v3857_v23 = vadd.f32 %v4150_v22, %v3849_v21 }
0x1ffb   :  { %v3856_v13 = vadd.f32 %v4150_v22, %v3848_v24  ;;  %v3871_v49 = vrot.slane %v3857_v23, 7 }
0x1ffd   :  { %v3873_v25 = vsel %vm3872_vm6, %v3871_v49, %v3856_v13 }
0x1ffe   :  { %4558 = vmatmul.mubr.msk.f32.vlgmr.msra.gmra.mxu1 %vm108_vm0, %v3873_v25 }
0x1fff   :  { %4568 = vmatprep.mubr.msk.f32.mxu1 %vm4757_vm1, %v4756_v35  ;;  %4561 = vmatpush3.msra.mxu1 %v3950_v26 }
0x2000   :  { %4562 = vmatprep.subr.mxu1 %v4756_v35 }
0x2001   :  { %4563 = vmatpush3.msra.mxu1 %v3949_v27 }
0x2002   :  { %4564 = vmatprep.subr.mxu1 %v4756_v35 }
0x2003   :  { %4565 = vmatpush3.msra.mxu1 %v3948_v28 }
0x2004   :  { %4566 = vmatprep.subr.mxu1 %v4756_v35 }
0x2005   :  { %4567 = vmatpush3.msra.mxu1 %v3947_v6 }
0x20be   :  { %v3942_v30 = vpop.f32.mrf.mxu1 }
0x20bf   :  { %v3943_v15 = vadd.f32 %v4151_v29, %v3942_v30 }
0x20c0   :  { %v4559_v31 = vpop.f32.mrf.mxu1 }
0x20c1   :  { %4683 = vtanh.f32 %v3943_v15 }
0x20ce   :  { %v4684_v33 = vpop.eup %4683 }
0x20cf   :  { %4569 = vmatmul.mubr.msk.f32.vlgmr.msra.gmra.mxu1 %vm108_vm0, %v4684_v33 }
0x218f   :  { %v4027_v37 = vpop.f32.mrf.mxu1 }
0x2190   :  { %v4028_v39 = vadd.f32 %v4153_v36, %v4027_v37 }
0x2191   :  { %v4570_v41 = vpop.f32.mrf.mxu1 }
0x2192   :  { %4032 = vst.msk [vmem:[%s5533_s20] sm:$0x3] %vm4031_vm7, %v4028_v39 }
0x2193   :  { %4037 = vsyncpa [#allocation4], 1 }
0x2194   :  { %4038 = vsyncpa [#allocation6], 1 }

</bundles_post_ra>
